<compile_context>
chip_gen: v7x
topology: tpu7x:2x2x1
jax: 0.10.0
libtpu: 0.0.40
codegen_flags: <defaults>
</compile_context>

<pallas_src>
import jax
import jax.numpy as jnp
from jax.experimental import pallas as pl
from jax.experimental.pallas import tpu as pltpu

LANE = 128
SUBLANE = 8


def _ceil_to(x, m):
    return ((x + m - 1) // m) * m


def _make_decoder_kernel(num_layers, seq_len, batch_pad, h_pad):
    L, S, Bp, Hp = num_layers, seq_len, batch_pad, h_pad

    def kernel(*refs):
        # refs: tokens, h0, emb, [w_ih, w_hh, b_in_combined, b_hn] * L,
        #       w_out, b_out, logp_out, hidden_out
        tok_ref, h0_ref, emb_ref = refs[0], refs[1], refs[2]
        layer_refs = refs[3:3 + 4 * L]
        w_out_ref = refs[3 + 4 * L]
        b_out_ref = refs[4 + 4 * L]
        logp_ref = refs[5 + 4 * L]
        hid_ref = refs[6 + 4 * L]

        # ---- Fused embedding lookup: one-hot (S*Bp, Op) @ table (Op, Ep). ----
        vocab_p = emb_ref.shape[0]
        tok = tok_ref[...]                                        # (S*Bp, 1) i32
        iota = jax.lax.broadcasted_iota(jnp.int32, (S * Bp, vocab_p), 1)
        onehot = (iota == tok).astype(jnp.float32)                # (S*Bp, Op)
        cur = jnp.dot(onehot, emb_ref[...],
                      preferred_element_type=jnp.float32)         # (S*Bp, Ep)
        cur = jnp.maximum(cur, 0.0)                               # F.relu

        h_first = None                                            # top layer, t=0
        for l in range(L):
            w_ih = layer_refs[4 * l + 0][...]                     # (in_p, 3*Hp)
            w_hh = layer_refs[4 * l + 1][...]                     # (Hp,   3*Hp)
            b_in = layer_refs[4 * l + 2][...]                     # (1,    3*Hp)
            b_hn = layer_refs[4 * l + 3][...]                     # (1,    Hp)

            # Hoisted: input projection (+ all biases except n-gate hidden bias)
            # for every timestep in one matmul, off the serial path.
            gi_all = jnp.dot(cur, w_ih,
                             preferred_element_type=jnp.float32) + b_in

            h = h0_ref[l]                                         # (Bp, Hp)
            outs = []
            for t in range(S):
                # Bp is a multiple of 8 -> this slice is sublane-tile aligned.
                gi = gi_all[t * Bp:(t + 1) * Bp, :]               # (Bp, 3*Hp)
                gh = jnp.dot(h, w_hh,
                             preferred_element_type=jnp.float32)  # (Bp, 3*Hp)
                # Gate slices are 128-lane aligned -> free vreg selections.
                r = jax.nn.sigmoid(gi[:, 0:Hp] + gh[:, 0:Hp])
                z = jax.nn.sigmoid(gi[:, Hp:2 * Hp] + gh[:, Hp:2 * Hp])
                n = jnp.tanh(gi[:, 2 * Hp:3 * Hp]
                             + r * (gh[:, 2 * Hp:3 * Hp] + b_hn))
                h = n + z * (h - n)                               # == (1-z)n + zh
                outs.append(h)

            hid_ref[l] = h                                        # final h, layer l
            if l + 1 == L:
                h_first = outs[0]
            else:
                cur = jnp.concatenate(outs, axis=0)               # (S*Bp, Hp)

        # Linear + LogSoftmax on output[0] (top layer, first timestep).
        # Padded logit lanes carry a -1e30 bias -> exp() == 0, max() ignores.
        logits = jnp.dot(h_first, w_out_ref[...],
                         preferred_element_type=jnp.float32) + b_out_ref[...]
        m = jnp.max(logits, axis=1, keepdims=True)
        lse = m + jnp.log(jnp.sum(jnp.exp(logits - m), axis=1, keepdims=True))
        logp_ref[...] = logits - lse

    return kernel


def _full_spec(shape):
    nd = len(shape)
    return pl.BlockSpec(shape, lambda i, _nd=nd: (0,) * _nd)


def prepare_params(params, hidden_size, embed_size, output_size, num_layers):
    """One-time conversion of PyTorch-layout params to lane-padded kernel layout."""
    H, E, O, L = hidden_size, embed_size, output_size, num_layers
    Hp, Ep, Op = _ceil_to(H, LANE), _ceil_to(E, LANE), _ceil_to(O, LANE)
    f32 = jnp.float32
    prep = {"H": H, "E": E, "O": O, "L": L, "Hp": Hp, "Ep": Ep, "Op": Op}

    prep["emb"] = jnp.zeros((Op, Ep), f32).at[:O, :E].set(params["embedding"])

    for l in range(L):
        in_dim = E if l == 0 else H
        in_p = Ep if l == 0 else Hp
        w_ih = params[f"w_ih_{l}"]                 # (3H, in_dim)
        w_hh = params[f"w_hh_{l}"]                 # (3H, H)
        b_ih = params[f"b_ih_{l}"]                 # (3H,)
        b_hh = params[f"b_hh_{l}"]                 # (3H,)
        wik = jnp.zeros((in_p, 3 * Hp), f32)
        whk = jnp.zeros((Hp, 3 * Hp), f32)
        bik = jnp.zeros((1, 3 * Hp), f32)
        for g in range(3):                         # gate order (r, z, n)
            cs = g * Hp
            wik = wik.at[:in_dim, cs:cs + H].set(w_ih[g * H:(g + 1) * H, :].T)
            whk = whk.at[:H, cs:cs + H].set(w_hh[g * H:(g + 1) * H, :].T)
            bik = bik.at[0, cs:cs + H].set(b_ih[g * H:(g + 1) * H])
        # Fold the hidden-path bias for the r and z gates into the (hoisted)
        # input bias; only the n-gate hidden bias must stay on the recurrence
        # (it sits inside r * (W_hn h + b_hn)).
        bik = bik.at[0, 0:H].add(b_hh[0:H])                       # + b_hr
        bik = bik.at[0, Hp:Hp + H].add(b_hh[H:2 * H])             # + b_hz
        bhn = jnp.zeros((1, Hp), f32).at[0, :H].set(b_hh[2 * H:3 * H])
        prep[f"w_ih_{l}"] = wik
        prep[f"w_hh_{l}"] = whk
        prep[f"b_in_{l}"] = bik
        prep[f"b_hn_{l}"] = bhn

    prep["w_out"] = jnp.zeros((Hp, Op), f32).at[:H, :O].set(params["w_out"].T)
    # Bake a very negative bias into padded logit lanes so the in-kernel
    # logsumexp ignores them without extra masking ops.
    prep["b_out"] = jnp.full((1, Op), -1e30, f32).at[0, :O].set(params["b_out"])
    return prep


def decoder_forward(tokens, hidden, prep):
    S, B = tokens.shape
    L, _, H = hidden.shape
    O, Hp, Op = prep["O"], prep["Hp"], prep["Op"]
    Bp = _ceil_to(B, SUBLANE)

    # Pad batch to 8 sublanes (padded rows use token 0 / zero hidden; they
    # evolve independently and are sliced off at the end).
    tok_p = jnp.zeros((S, Bp), jnp.int32).at[:, :B].set(tokens.astype(jnp.int32))
    tok_flat = tok_p.reshape(S * Bp, 1)
    h0 = jnp.zeros((L, Bp, Hp), jnp.float32)
    h0 = h0.at[:, :B, :H].set(hidden.astype(jnp.float32))

    inputs = [tok_flat, h0, prep["emb"]]
    for l in range(L):
        inputs += [prep[f"w_ih_{l}"], prep[f"w_hh_{l}"],
                   prep[f"b_in_{l}"], prep[f"b_hn_{l}"]]
    inputs += [prep["w_out"], prep["b_out"]]

    kernel = _make_decoder_kernel(L, S, Bp, Hp)
    logp_p, hid_p = pl.pallas_call(
        kernel,
        grid=(1,),
        in_specs=[_full_spec(a.shape) for a in inputs],
        out_specs=(_full_spec((Bp, Op)), _full_spec((L, Bp, Hp))),
        out_shape=(jax.ShapeDtypeStruct((Bp, Op), jnp.float32),
                   jax.ShapeDtypeStruct((L, Bp, Hp), jnp.float32)),
        compiler_params=pltpu.CompilerParams(
            dimension_semantics=("arbitrary",)),
    )(*inputs)
    return logp_p[:B, :O], hid_p[:, :B, :H]


def decoder_reference(tokens, hidden, params):
    """Pure-JAX reference mirroring the PyTorch forward pass."""
    emb = jnp.take(params["embedding"], tokens, axis=0)
    x = jnp.maximum(emb, 0.0)
    L, _, H = hidden.shape
    S = x.shape[0]
    cur = x
    new_h = []
    for l in range(L):
        w_ih = params[f"w_ih_{l}"]
        w_hh = params[f"w_hh_{l}"]
        b_ih = params[f"b_ih_{l}"]
        b_hh = params[f"b_hh_{l}"]
        h = hidden[l]
        outs = []
        for t in range(S):
            gi = jnp.dot(cur[t], w_ih.T) + b_ih
            gh = jnp.dot(h, w_hh.T) + b_hh
            r = jax.nn.sigmoid(gi[:, :H] + gh[:, :H])
            z = jax.nn.sigmoid(gi[:, H:2 * H] + gh[:, H:2 * H])
            n = jnp.tanh(gi[:, 2 * H:] + r * gh[:, 2 * H:])
            h = (1.0 - z) * n + z * h
            outs.append(h)
        new_h.append(h)
        cur = jnp.stack(outs, 0)
    logits = jnp.dot(cur[0], params["w_out"].T) + params["b_out"]
    return jax.nn.log_softmax(logits, axis=1), jnp.stack(new_h, 0)


def init_params(key, hidden_size, output_size, embed_size, num_layers):
    """Deterministic synthetic parameters in PyTorch layout."""
    H, E, O = hidden_size, embed_size, output_size
    keys = jax.random.split(key, 3 + 4 * num_layers)
    params = {"embedding": 0.1 * jax.random.normal(keys[0], (O, E), jnp.float32)}
    for l in range(num_layers):
        in_dim = E if l == 0 else H
        k = keys[1 + 4 * l: 5 + 4 * l]
        params[f"w_ih_{l}"] = 0.2 * jax.random.normal(k[0], (3 * H, in_dim), jnp.float32)
        params[f"w_hh_{l}"] = 0.2 * jax.random.normal(k[1], (3 * H, H), jnp.float32)
        params[f"b_ih_{l}"] = 0.1 * jax.random.normal(k[2], (3 * H,), jnp.float32)
        params[f"b_hh_{l}"] = 0.1 * jax.random.normal(k[3], (3 * H,), jnp.float32)
    params["w_out"] = 0.2 * jax.random.normal(keys[1 + 4 * num_layers], (O, H), jnp.float32)
    params["b_out"] = 0.1 * jax.random.normal(keys[2 + 4 * num_layers], (O,), jnp.float32)
    return params


if __name__ == "__main__":
    # Small shapes consistent with the module's forward pass.
    hidden_size = 32
    output_size = 20
    embed_size = 16
    num_layers = 2
    feature_size = 8   # unused by Decoder.forward (matches the PyTorch module)
    seq_len = 4
    batch = 2

    root = jax.random.PRNGKey(0)
    k_tok, k_h, k_p = jax.random.split(root, 3)
    tokens = jax.random.randint(k_tok, (seq_len, batch), 0, output_size, dtype=jnp.int32)
    hidden0 = jax.random.normal(k_h, (num_layers, batch, hidden_size), dtype=jnp.float32)
    params = init_params(k_p, hidden_size, output_size, embed_size, num_layers)

    # Weight layout prepared ONCE (kernel layout: transposed, lane-padded,
    # r/z hidden biases folded into the hoisted input bias).
    prep = prepare_params(params, hidden_size, embed_size, output_size, num_layers)

    logp, hidden_out = decoder_forward(tokens, hidden0, prep)
    jax.block_until_ready((logp, hidden_out))

    ref_logp, ref_hidden = decoder_reference(tokens, hidden0, params)
    assert logp.shape == (batch, output_size)
    assert hidden_out.shape == (num_layers, batch, hidden_size)
    # Default (single-pass bf16) MXU precision in the kernel -> 5e-3 tolerance.
    assert jnp.allclose(logp, ref_logp, atol=5e-3, rtol=5e-3)
    assert jnp.allclose(hidden_out, ref_hidden, atol=5e-3, rtol=5e-3)

    print("KERNEL_OK")
</pallas_src>

<mosaic_0001>
module attributes {stable_mosaic.version = 11 : i64} {
  func.func @kernel(%arg0: i32, %arg1: memref<32x1xi32, #tpu.memory_space<vmem>>, %arg2: memref<2x8x128xf32, #tpu.memory_space<vmem>>, %arg3: memref<128x128xf32, #tpu.memory_space<vmem>>, %arg4: memref<128x384xf32, #tpu.memory_space<vmem>>, %arg5: memref<128x384xf32, #tpu.memory_space<vmem>>, %arg6: memref<1x384xf32, #tpu.memory_space<vmem>>, %arg7: memref<1x128xf32, #tpu.memory_space<vmem>>, %arg8: memref<128x384xf32, #tpu.memory_space<vmem>>, %arg9: memref<128x384xf32, #tpu.memory_space<vmem>>, %arg10: memref<1x384xf32, #tpu.memory_space<vmem>>, %arg11: memref<1x128xf32, #tpu.memory_space<vmem>>, %arg12: memref<128x128xf32, #tpu.memory_space<vmem>>, %arg13: memref<1x128xf32, #tpu.memory_space<vmem>>, %arg14: memref<8x128xf32, #tpu.memory_space<vmem>>, %arg15: memref<2x8x128xf32, #tpu.memory_space<vmem>>) attributes {dimension_semantics = [#tpu.dimension_semantics<arbitrary>], iteration_bounds = array<i64: 1>, scalar_prefetch = 0 : i64, scratch_operands = 0 : i64, tpu.core_type = #tpu.core_type<tc>, window_params = [{pipeline_mode = #tpu.pipeline_mode<synchronous>, transform_indices = @transform_0, window_bounds = array<i64: 32, 1>}, {pipeline_mode = #tpu.pipeline_mode<synchronous>, transform_indices = @transform_1, window_bounds = array<i64: 2, 8, 128>}, {pipeline_mode = #tpu.pipeline_mode<synchronous>, transform_indices = @transform_2, window_bounds = array<i64: 128, 128>}, {pipeline_mode = #tpu.pipeline_mode<synchronous>, transform_indices = @transform_3, window_bounds = array<i64: 128, 384>}, {pipeline_mode = #tpu.pipeline_mode<synchronous>, transform_indices = @transform_4, window_bounds = array<i64: 128, 384>}, {pipeline_mode = #tpu.pipeline_mode<synchronous>, transform_indices = @transform_5, window_bounds = array<i64: 1, 384>}, {pipeline_mode = #tpu.pipeline_mode<synchronous>, transform_indices = @transform_6, window_bounds = array<i64: 1, 128>}, {pipeline_mode = #tpu.pipeline_mode<synchronous>, transform_indices = @transform_7, window_bounds = array<i64: 128, 384>}, {pipeline_mode = #tpu.pipeline_mode<synchronous>, transform_indices = @transform_8, window_bounds = array<i64: 128, 384>}, {pipeline_mode = #tpu.pipeline_mode<synchronous>, transform_indices = @transform_9, window_bounds = array<i64: 1, 384>}, {pipeline_mode = #tpu.pipeline_mode<synchronous>, transform_indices = @transform_10, window_bounds = array<i64: 1, 128>}, {pipeline_mode = #tpu.pipeline_mode<synchronous>, transform_indices = @transform_11, window_bounds = array<i64: 128, 128>}, {pipeline_mode = #tpu.pipeline_mode<synchronous>, transform_indices = @transform_12, window_bounds = array<i64: 1, 128>}, {pipeline_mode = #tpu.pipeline_mode<synchronous>, transform_indices = @transform_13, window_bounds = array<i64: 8, 128>}, {pipeline_mode = #tpu.pipeline_mode<synchronous>, transform_indices = @transform_14, window_bounds = array<i64: 2, 8, 128>}]} {
    %c0 = arith.constant 0 : index
    %c0_0 = arith.constant 0 : index
    %0 = vector.load %arg1[%c0, %c0_0] : memref<32x1xi32, #tpu.memory_space<vmem>>, vector<32x1xi32>
    %1 = tpu.iota {dimensions = array<i32: 1>} : vector<32x128xi32>
    %2 = vector.broadcast %0 : vector<32x1xi32> to vector<32x128xi32>
    %3 = arith.cmpi eq, %1, %2 : vector<32x128xi32>
    %4 = arith.extui %3 : vector<32x128xi1> to vector<32x128xi32>
    %5 = arith.sitofp %4 : vector<32x128xi32> to vector<32x128xf32>
    %c0_1 = arith.constant 0 : index
    %c0_2 = arith.constant 0 : index
    %6 = vector.load %arg3[%c0_1, %c0_2] : memref<128x128xf32, #tpu.memory_space<vmem>>, vector<128x128xf32>
    %cst = arith.constant dense<0.000000e+00> : vector<32x128xf32>
    %7 = tpu.matmul %5, %6, %cst {dimension_numbers = #tpu.dot_dimension_numbers<[1], [0], [0], [1], [0, 0, 1, 1], [], []>} : vector<32x128xf32>, vector<128x128xf32>, vector<32x128xf32> -> vector<32x128xf32>
    %cst_3 = arith.constant 0.000000e+00 : f32
    %8 = vector.broadcast %cst_3 : f32 to vector<32x128xf32>
    %9 = arith.maximumf %7, %8 : vector<32x128xf32>
    %c0_4 = arith.constant 0 : index
    %c0_5 = arith.constant 0 : index
    %10 = vector.load %arg4[%c0_4, %c0_5] : memref<128x384xf32, #tpu.memory_space<vmem>>, vector<128x384xf32>
    %c0_6 = arith.constant 0 : index
    %c0_7 = arith.constant 0 : index
    %11 = vector.load %arg5[%c0_6, %c0_7] : memref<128x384xf32, #tpu.memory_space<vmem>>, vector<128x384xf32>
    %c0_8 = arith.constant 0 : index
    %c0_9 = arith.constant 0 : index
    %12 = vector.load %arg6[%c0_8, %c0_9] : memref<1x384xf32, #tpu.memory_space<vmem>>, vector<1x384xf32>
    %c0_10 = arith.constant 0 : index
    %c0_11 = arith.constant 0 : index
    %13 = vector.load %arg7[%c0_10, %c0_11] : memref<1x128xf32, #tpu.memory_space<vmem>>, vector<1x128xf32>
    %cst_12 = arith.constant dense<0.000000e+00> : vector<32x384xf32>
    %14 = tpu.matmul %9, %10, %cst_12 {dimension_numbers = #tpu.dot_dimension_numbers<[1], [0], [0], [1], [0, 0, 1, 1], [], []>} : vector<32x128xf32>, vector<128x384xf32>, vector<32x384xf32> -> vector<32x384xf32>
    %15 = vector.broadcast %12 : vector<1x384xf32> to vector<32x384xf32>
    %16 = arith.addf %14, %15 : vector<32x384xf32>
    %c0_13 = arith.constant 0 : index
    %c0_14 = arith.constant 0 : index
    %c0_15 = arith.constant 0 : index
    %17 = vector.load %arg2[%c0_13, %c0_14, %c0_15] : memref<2x8x128xf32, #tpu.memory_space<vmem>>, vector<1x8x128xf32>
    %18 = vector.shape_cast %17 : vector<1x8x128xf32> to vector<8x128xf32>
    %19 = vector.extract_strided_slice %16 {offsets = [0, 0], sizes = [8, 384], strides = [1, 1]} : vector<32x384xf32> to vector<8x384xf32>
    %cst_16 = arith.constant dense<0.000000e+00> : vector<8x384xf32>
    %20 = tpu.matmul %18, %11, %cst_16 {dimension_numbers = #tpu.dot_dimension_numbers<[1], [0], [0], [1], [0, 0, 1, 1], [], []>} : vector<8x128xf32>, vector<128x384xf32>, vector<8x384xf32> -> vector<8x384xf32>
    %21 = vector.extract_strided_slice %19 {offsets = [0, 0], sizes = [8, 128], strides = [1, 1]} : vector<8x384xf32> to vector<8x128xf32>
    %22 = vector.extract_strided_slice %20 {offsets = [0, 0], sizes = [8, 128], strides = [1, 1]} : vector<8x384xf32> to vector<8x128xf32>
    %23 = arith.addf %21, %22 : vector<8x128xf32>
    %24 = arith.negf %23 : vector<8x128xf32>
    %25 = math.exp %24 : vector<8x128xf32>
    %cst_17 = arith.constant 1.000000e+00 : f32
    %26 = vector.broadcast %cst_17 : f32 to vector<8x128xf32>
    %27 = arith.addf %26, %25 : vector<8x128xf32>
    %28 = arith.divf %26, %27 : vector<8x128xf32>
    %29 = vector.extract_strided_slice %19 {offsets = [0, 128], sizes = [8, 128], strides = [1, 1]} : vector<8x384xf32> to vector<8x128xf32>
    %30 = vector.extract_strided_slice %20 {offsets = [0, 128], sizes = [8, 128], strides = [1, 1]} : vector<8x384xf32> to vector<8x128xf32>
    %31 = arith.addf %29, %30 : vector<8x128xf32>
    %32 = arith.negf %31 : vector<8x128xf32>
    %33 = math.exp %32 : vector<8x128xf32>
    %cst_18 = arith.constant 1.000000e+00 : f32
    %34 = vector.broadcast %cst_18 : f32 to vector<8x128xf32>
    %35 = arith.addf %34, %33 : vector<8x128xf32>
    %36 = arith.divf %34, %35 : vector<8x128xf32>
    %37 = vector.extract_strided_slice %19 {offsets = [0, 256], sizes = [8, 128], strides = [1, 1]} : vector<8x384xf32> to vector<8x128xf32>
    %38 = vector.extract_strided_slice %20 {offsets = [0, 256], sizes = [8, 128], strides = [1, 1]} : vector<8x384xf32> to vector<8x128xf32>
    %39 = vector.broadcast %13 : vector<1x128xf32> to vector<8x128xf32>
    %40 = arith.addf %38, %39 : vector<8x128xf32>
    %41 = arith.mulf %28, %40 : vector<8x128xf32>
    %42 = arith.addf %37, %41 : vector<8x128xf32>
    %43 = math.tanh %42 : vector<8x128xf32>
    %44 = arith.subf %18, %43 : vector<8x128xf32>
    %45 = arith.mulf %36, %44 : vector<8x128xf32>
    %46 = arith.addf %43, %45 : vector<8x128xf32>
    %47 = vector.extract_strided_slice %16 {offsets = [8, 0], sizes = [8, 384], strides = [1, 1]} : vector<32x384xf32> to vector<8x384xf32>
    %cst_19 = arith.constant dense<0.000000e+00> : vector<8x384xf32>
    %48 = tpu.matmul %46, %11, %cst_19 {dimension_numbers = #tpu.dot_dimension_numbers<[1], [0], [0], [1], [0, 0, 1, 1], [], []>} : vector<8x128xf32>, vector<128x384xf32>, vector<8x384xf32> -> vector<8x384xf32>
    %49 = vector.extract_strided_slice %47 {offsets = [0, 0], sizes = [8, 128], strides = [1, 1]} : vector<8x384xf32> to vector<8x128xf32>
    %50 = vector.extract_strided_slice %48 {offsets = [0, 0], sizes = [8, 128], strides = [1, 1]} : vector<8x384xf32> to vector<8x128xf32>
    %51 = arith.addf %49, %50 : vector<8x128xf32>
    %52 = arith.negf %51 : vector<8x128xf32>
    %53 = math.exp %52 : vector<8x128xf32>
    %cst_20 = arith.constant 1.000000e+00 : f32
    %54 = vector.broadcast %cst_20 : f32 to vector<8x128xf32>
    %55 = arith.addf %54, %53 : vector<8x128xf32>
    %56 = arith.divf %54, %55 : vector<8x128xf32>
    %57 = vector.extract_strided_slice %47 {offsets = [0, 128], sizes = [8, 128], strides = [1, 1]} : vector<8x384xf32> to vector<8x128xf32>
    %58 = vector.extract_strided_slice %48 {offsets = [0, 128], sizes = [8, 128], strides = [1, 1]} : vector<8x384xf32> to vector<8x128xf32>
    %59 = arith.addf %57, %58 : vector<8x128xf32>
    %60 = arith.negf %59 : vector<8x128xf32>
    %61 = math.exp %60 : vector<8x128xf32>
    %cst_21 = arith.constant 1.000000e+00 : f32
    %62 = vector.broadcast %cst_21 : f32 to vector<8x128xf32>
    %63 = arith.addf %62, %61 : vector<8x128xf32>
    %64 = arith.divf %62, %63 : vector<8x128xf32>
    %65 = vector.extract_strided_slice %47 {offsets = [0, 256], sizes = [8, 128], strides = [1, 1]} : vector<8x384xf32> to vector<8x128xf32>
    %66 = vector.extract_strided_slice %48 {offsets = [0, 256], sizes = [8, 128], strides = [1, 1]} : vector<8x384xf32> to vector<8x128xf32>
    %67 = vector.broadcast %13 : vector<1x128xf32> to vector<8x128xf32>
    %68 = arith.addf %66, %67 : vector<8x128xf32>
    %69 = arith.mulf %56, %68 : vector<8x128xf32>
    %70 = arith.addf %65, %69 : vector<8x128xf32>
    %71 = math.tanh %70 : vector<8x128xf32>
    %72 = arith.subf %46, %71 : vector<8x128xf32>
    %73 = arith.mulf %64, %72 : vector<8x128xf32>
    %74 = arith.addf %71, %73 : vector<8x128xf32>
    %75 = vector.extract_strided_slice %16 {offsets = [16, 0], sizes = [8, 384], strides = [1, 1]} : vector<32x384xf32> to vector<8x384xf32>
    %cst_22 = arith.constant dense<0.000000e+00> : vector<8x384xf32>
    %76 = tpu.matmul %74, %11, %cst_22 {dimension_numbers = #tpu.dot_dimension_numbers<[1], [0], [0], [1], [0, 0, 1, 1], [], []>} : vector<8x128xf32>, vector<128x384xf32>, vector<8x384xf32> -> vector<8x384xf32>
    %77 = vector.extract_strided_slice %75 {offsets = [0, 0], sizes = [8, 128], strides = [1, 1]} : vector<8x384xf32> to vector<8x128xf32>
    %78 = vector.extract_strided_slice %76 {offsets = [0, 0], sizes = [8, 128], strides = [1, 1]} : vector<8x384xf32> to vector<8x128xf32>
    %79 = arith.addf %77, %78 : vector<8x128xf32>
    %80 = arith.negf %79 : vector<8x128xf32>
    %81 = math.exp %80 : vector<8x128xf32>
    %cst_23 = arith.constant 1.000000e+00 : f32
    %82 = vector.broadcast %cst_23 : f32 to vector<8x128xf32>
    %83 = arith.addf %82, %81 : vector<8x128xf32>
    %84 = arith.divf %82, %83 : vector<8x128xf32>
    %85 = vector.extract_strided_slice %75 {offsets = [0, 128], sizes = [8, 128], strides = [1, 1]} : vector<8x384xf32> to vector<8x128xf32>
    %86 = vector.extract_strided_slice %76 {offsets = [0, 128], sizes = [8, 128], strides = [1, 1]} : vector<8x384xf32> to vector<8x128xf32>
    %87 = arith.addf %85, %86 : vector<8x128xf32>
    %88 = arith.negf %87 : vector<8x128xf32>
    %89 = math.exp %88 : vector<8x128xf32>
    %cst_24 = arith.constant 1.000000e+00 : f32
    %90 = vector.broadcast %cst_24 : f32 to vector<8x128xf32>
    %91 = arith.addf %90, %89 : vector<8x128xf32>
    %92 = arith.divf %90, %91 : vector<8x128xf32>
    %93 = vector.extract_strided_slice %75 {offsets = [0, 256], sizes = [8, 128], strides = [1, 1]} : vector<8x384xf32> to vector<8x128xf32>
    %94 = vector.extract_strided_slice %76 {offsets = [0, 256], sizes = [8, 128], strides = [1, 1]} : vector<8x384xf32> to vector<8x128xf32>
    %95 = vector.broadcast %13 : vector<1x128xf32> to vector<8x128xf32>
    %96 = arith.addf %94, %95 : vector<8x128xf32>
    %97 = arith.mulf %84, %96 : vector<8x128xf32>
    %98 = arith.addf %93, %97 : vector<8x128xf32>
    %99 = math.tanh %98 : vector<8x128xf32>
    %100 = arith.subf %74, %99 : vector<8x128xf32>
    %101 = arith.mulf %92, %100 : vector<8x128xf32>
    %102 = arith.addf %99, %101 : vector<8x128xf32>
    %103 = vector.extract_strided_slice %16 {offsets = [24, 0], sizes = [8, 384], strides = [1, 1]} : vector<32x384xf32> to vector<8x384xf32>
    %cst_25 = arith.constant dense<0.000000e+00> : vector<8x384xf32>
    %104 = tpu.matmul %102, %11, %cst_25 {dimension_numbers = #tpu.dot_dimension_numbers<[1], [0], [0], [1], [0, 0, 1, 1], [], []>} : vector<8x128xf32>, vector<128x384xf32>, vector<8x384xf32> -> vector<8x384xf32>
    %105 = vector.extract_strided_slice %103 {offsets = [0, 0], sizes = [8, 128], strides = [1, 1]} : vector<8x384xf32> to vector<8x128xf32>
    %106 = vector.extract_strided_slice %104 {offsets = [0, 0], sizes = [8, 128], strides = [1, 1]} : vector<8x384xf32> to vector<8x128xf32>
    %107 = arith.addf %105, %106 : vector<8x128xf32>
    %108 = arith.negf %107 : vector<8x128xf32>
    %109 = math.exp %108 : vector<8x128xf32>
    %cst_26 = arith.constant 1.000000e+00 : f32
    %110 = vector.broadcast %cst_26 : f32 to vector<8x128xf32>
    %111 = arith.addf %110, %109 : vector<8x128xf32>
    %112 = arith.divf %110, %111 : vector<8x128xf32>
    %113 = vector.extract_strided_slice %103 {offsets = [0, 128], sizes = [8, 128], strides = [1, 1]} : vector<8x384xf32> to vector<8x128xf32>
    %114 = vector.extract_strided_slice %104 {offsets = [0, 128], sizes = [8, 128], strides = [1, 1]} : vector<8x384xf32> to vector<8x128xf32>
    %115 = arith.addf %113, %114 : vector<8x128xf32>
    %116 = arith.negf %115 : vector<8x128xf32>
    %117 = math.exp %116 : vector<8x128xf32>
    %cst_27 = arith.constant 1.000000e+00 : f32
    %118 = vector.broadcast %cst_27 : f32 to vector<8x128xf32>
    %119 = arith.addf %118, %117 : vector<8x128xf32>
    %120 = arith.divf %118, %119 : vector<8x128xf32>
    %121 = vector.extract_strided_slice %103 {offsets = [0, 256], sizes = [8, 128], strides = [1, 1]} : vector<8x384xf32> to vector<8x128xf32>
    %122 = vector.extract_strided_slice %104 {offsets = [0, 256], sizes = [8, 128], strides = [1, 1]} : vector<8x384xf32> to vector<8x128xf32>
    %123 = vector.broadcast %13 : vector<1x128xf32> to vector<8x128xf32>
    %124 = arith.addf %122, %123 : vector<8x128xf32>
    %125 = arith.mulf %112, %124 : vector<8x128xf32>
    %126 = arith.addf %121, %125 : vector<8x128xf32>
    %127 = math.tanh %126 : vector<8x128xf32>
    %128 = arith.subf %102, %127 : vector<8x128xf32>
    %129 = arith.mulf %120, %128 : vector<8x128xf32>
    %130 = arith.addf %127, %129 : vector<8x128xf32>
    %c0_28 = arith.constant 0 : index
    %c0_29 = arith.constant 0 : index
    %c0_30 = arith.constant 0 : index
    %131 = vector.load %arg15[%c0_28, %c0_29, %c0_30] : memref<2x8x128xf32, #tpu.memory_space<vmem>>, vector<1x8x128xf32>
    %132 = vector.shape_cast %131 : vector<1x8x128xf32> to vector<8x128xf32>
    %133 = vector.shape_cast %130 : vector<8x128xf32> to vector<1x8x128xf32>
    tpu.vector_store %arg15[%c0_28, %c0_29, %c0_30], %133 {strides = array<i32>} : memref<2x8x128xf32, #tpu.memory_space<vmem>>, vector<1x8x128xf32>,
    %134 = tpu.concatenate %46, %74, %102, %130 in 0 : vector<8x128xf32>, vector<8x128xf32>, vector<8x128xf32>, vector<8x128xf32> -> vector<32x128xf32>
    %c0_31 = arith.constant 0 : index
    %c0_32 = arith.constant 0 : index
    %135 = vector.load %arg8[%c0_31, %c0_32] : memref<128x384xf32, #tpu.memory_space<vmem>>, vector<128x384xf32>
    %c0_33 = arith.constant 0 : index
    %c0_34 = arith.constant 0 : index
    %136 = vector.load %arg9[%c0_33, %c0_34] : memref<128x384xf32, #tpu.memory_space<vmem>>, vector<128x384xf32>
    %c0_35 = arith.constant 0 : index
    %c0_36 = arith.constant 0 : index
    %137 = vector.load %arg10[%c0_35, %c0_36] : memref<1x384xf32, #tpu.memory_space<vmem>>, vector<1x384xf32>
    %c0_37 = arith.constant 0 : index
    %c0_38 = arith.constant 0 : index
    %138 = vector.load %arg11[%c0_37, %c0_38] : memref<1x128xf32, #tpu.memory_space<vmem>>, vector<1x128xf32>
    %cst_39 = arith.constant dense<0.000000e+00> : vector<32x384xf32>
    %139 = tpu.matmul %134, %135, %cst_39 {dimension_numbers = #tpu.dot_dimension_numbers<[1], [0], [0], [1], [0, 0, 1, 1], [], []>} : vector<32x128xf32>, vector<128x384xf32>, vector<32x384xf32> -> vector<32x384xf32>
    %140 = vector.broadcast %137 : vector<1x384xf32> to vector<32x384xf32>
    %141 = arith.addf %139, %140 : vector<32x384xf32>
    %c1 = arith.constant 1 : index
    %c0_40 = arith.constant 0 : index
    %c0_41 = arith.constant 0 : index
    %142 = vector.load %arg2[%c1, %c0_40, %c0_41] : memref<2x8x128xf32, #tpu.memory_space<vmem>>, vector<1x8x128xf32>
    %143 = vector.shape_cast %142 : vector<1x8x128xf32> to vector<8x128xf32>
    %144 = vector.extract_strided_slice %141 {offsets = [0, 0], sizes = [8, 384], strides = [1, 1]} : vector<32x384xf32> to vector<8x384xf32>
    %cst_42 = arith.constant dense<0.000000e+00> : vector<8x384xf32>
    %145 = tpu.matmul %143, %136, %cst_42 {dimension_numbers = #tpu.dot_dimension_numbers<[1], [0], [0], [1], [0, 0, 1, 1], [], []>} : vector<8x128xf32>, vector<128x384xf32>, vector<8x384xf32> -> vector<8x384xf32>
    %146 = vector.extract_strided_slice %144 {offsets = [0, 0], sizes = [8, 128], strides = [1, 1]} : vector<8x384xf32> to vector<8x128xf32>
    %147 = vector.extract_strided_slice %145 {offsets = [0, 0], sizes = [8, 128], strides = [1, 1]} : vector<8x384xf32> to vector<8x128xf32>
    %148 = arith.addf %146, %147 : vector<8x128xf32>
    %149 = arith.negf %148 : vector<8x128xf32>
    %150 = math.exp %149 : vector<8x128xf32>
    %cst_43 = arith.constant 1.000000e+00 : f32
    %151 = vector.broadcast %cst_43 : f32 to vector<8x128xf32>
    %152 = arith.addf %151, %150 : vector<8x128xf32>
    %153 = arith.divf %151, %152 : vector<8x128xf32>
    %154 = vector.extract_strided_slice %144 {offsets = [0, 128], sizes = [8, 128], strides = [1, 1]} : vector<8x384xf32> to vector<8x128xf32>
    %155 = vector.extract_strided_slice %145 {offsets = [0, 128], sizes = [8, 128], strides = [1, 1]} : vector<8x384xf32> to vector<8x128xf32>
    %156 = arith.addf %154, %155 : vector<8x128xf32>
    %157 = arith.negf %156 : vector<8x128xf32>
    %158 = math.exp %157 : vector<8x128xf32>
    %cst_44 = arith.constant 1.000000e+00 : f32
    %159 = vector.broadcast %cst_44 : f32 to vector<8x128xf32>
    %160 = arith.addf %159, %158 : vector<8x128xf32>
    %161 = arith.divf %159, %160 : vector<8x128xf32>
    %162 = vector.extract_strided_slice %144 {offsets = [0, 256], sizes = [8, 128], strides = [1, 1]} : vector<8x384xf32> to vector<8x128xf32>
    %163 = vector.extract_strided_slice %145 {offsets = [0, 256], sizes = [8, 128], strides = [1, 1]} : vector<8x384xf32> to vector<8x128xf32>
    %164 = vector.broadcast %138 : vector<1x128xf32> to vector<8x128xf32>
    %165 = arith.addf %163, %164 : vector<8x128xf32>
    %166 = arith.mulf %153, %165 : vector<8x128xf32>
    %167 = arith.addf %162, %166 : vector<8x128xf32>
    %168 = math.tanh %167 : vector<8x128xf32>
    %169 = arith.subf %143, %168 : vector<8x128xf32>
    %170 = arith.mulf %161, %169 : vector<8x128xf32>
    %171 = arith.addf %168, %170 : vector<8x128xf32>
    %172 = vector.extract_strided_slice %141 {offsets = [8, 0], sizes = [8, 384], strides = [1, 1]} : vector<32x384xf32> to vector<8x384xf32>
    %cst_45 = arith.constant dense<0.000000e+00> : vector<8x384xf32>
    %173 = tpu.matmul %171, %136, %cst_45 {dimension_numbers = #tpu.dot_dimension_numbers<[1], [0], [0], [1], [0, 0, 1, 1], [], []>} : vector<8x128xf32>, vector<128x384xf32>, vector<8x384xf32> -> vector<8x384xf32>
    %174 = vector.extract_strided_slice %172 {offsets = [0, 0], sizes = [8, 128], strides = [1, 1]} : vector<8x384xf32> to vector<8x128xf32>
    %175 = vector.extract_strided_slice %173 {offsets = [0, 0], sizes = [8, 128], strides = [1, 1]} : vector<8x384xf32> to vector<8x128xf32>
    %176 = arith.addf %174, %175 : vector<8x128xf32>
    %177 = arith.negf %176 : vector<8x128xf32>
    %178 = math.exp %177 : vector<8x128xf32>
    %cst_46 = arith.constant 1.000000e+00 : f32
    %179 = vector.broadcast %cst_46 : f32 to vector<8x128xf32>
    %180 = arith.addf %179, %178 : vector<8x128xf32>
    %181 = arith.divf %179, %180 : vector<8x128xf32>
    %182 = vector.extract_strided_slice %172 {offsets = [0, 128], sizes = [8, 128], strides = [1, 1]} : vector<8x384xf32> to vector<8x128xf32>
    %183 = vector.extract_strided_slice %173 {offsets = [0, 128], sizes = [8, 128], strides = [1, 1]} : vector<8x384xf32> to vector<8x128xf32>
    %184 = arith.addf %182, %183 : vector<8x128xf32>
    %185 = arith.negf %184 : vector<8x128xf32>
    %186 = math.exp %185 : vector<8x128xf32>
    %cst_47 = arith.constant 1.000000e+00 : f32
    %187 = vector.broadcast %cst_47 : f32 to vector<8x128xf32>
    %188 = arith.addf %187, %186 : vector<8x128xf32>
    %189 = arith.divf %187, %188 : vector<8x128xf32>
    %190 = vector.extract_strided_slice %172 {offsets = [0, 256], sizes = [8, 128], strides = [1, 1]} : vector<8x384xf32> to vector<8x128xf32>
    %191 = vector.extract_strided_slice %173 {offsets = [0, 256], sizes = [8, 128], strides = [1, 1]} : vector<8x384xf32> to vector<8x128xf32>
    %192 = vector.broadcast %138 : vector<1x128xf32> to vector<8x128xf32>
    %193 = arith.addf %191, %192 : vector<8x128xf32>
    %194 = arith.mulf %181, %193 : vector<8x128xf32>
    %195 = arith.addf %190, %194 : vector<8x128xf32>
    %196 = math.tanh %195 : vector<8x128xf32>
    %197 = arith.subf %171, %196 : vector<8x128xf32>
    %198 = arith.mulf %189, %197 : vector<8x128xf32>
    %199 = arith.addf %196, %198 : vector<8x128xf32>
    %200 = vector.extract_strided_slice %141 {offsets = [16, 0], sizes = [8, 384], strides = [1, 1]} : vector<32x384xf32> to vector<8x384xf32>
    %cst_48 = arith.constant dense<0.000000e+00> : vector<8x384xf32>
    %201 = tpu.matmul %199, %136, %cst_48 {dimension_numbers = #tpu.dot_dimension_numbers<[1], [0], [0], [1], [0, 0, 1, 1], [], []>} : vector<8x128xf32>, vector<128x384xf32>, vector<8x384xf32> -> vector<8x384xf32>
    %202 = vector.extract_strided_slice %200 {offsets = [0, 0], sizes = [8, 128], strides = [1, 1]} : vector<8x384xf32> to vector<8x128xf32>
    %203 = vector.extract_strided_slice %201 {offsets = [0, 0], sizes = [8, 128], strides = [1, 1]} : vector<8x384xf32> to vector<8x128xf32>
    %204 = arith.addf %202, %203 : vector<8x128xf32>
    %205 = arith.negf %204 : vector<8x128xf32>
    %206 = math.exp %205 : vector<8x128xf32>
    %cst_49 = arith.constant 1.000000e+00 : f32
    %207 = vector.broadcast %cst_49 : f32 to vector<8x128xf32>
    %208 = arith.addf %207, %206 : vector<8x128xf32>
    %209 = arith.divf %207, %208 : vector<8x128xf32>
    %210 = vector.extract_strided_slice %200 {offsets = [0, 128], sizes = [8, 128], strides = [1, 1]} : vector<8x384xf32> to vector<8x128xf32>
    %211 = vector.extract_strided_slice %201 {offsets = [0, 128], sizes = [8, 128], strides = [1, 1]} : vector<8x384xf32> to vector<8x128xf32>
    %212 = arith.addf %210, %211 : vector<8x128xf32>
    %213 = arith.negf %212 : vector<8x128xf32>
    %214 = math.exp %213 : vector<8x128xf32>
    %cst_50 = arith.constant 1.000000e+00 : f32
    %215 = vector.broadcast %cst_50 : f32 to vector<8x128xf32>
    %216 = arith.addf %215, %214 : vector<8x128xf32>
    %217 = arith.divf %215, %216 : vector<8x128xf32>
    %218 = vector.extract_strided_slice %200 {offsets = [0, 256], sizes = [8, 128], strides = [1, 1]} : vector<8x384xf32> to vector<8x128xf32>
    %219 = vector.extract_strided_slice %201 {offsets = [0, 256], sizes = [8, 128], strides = [1, 1]} : vector<8x384xf32> to vector<8x128xf32>
    %220 = vector.broadcast %138 : vector<1x128xf32> to vector<8x128xf32>
    %221 = arith.addf %219, %220 : vector<8x128xf32>
    %222 = arith.mulf %209, %221 : vector<8x128xf32>
    %223 = arith.addf %218, %222 : vector<8x128xf32>
    %224 = math.tanh %223 : vector<8x128xf32>
    %225 = arith.subf %199, %224 : vector<8x128xf32>
    %226 = arith.mulf %217, %225 : vector<8x128xf32>
    %227 = arith.addf %224, %226 : vector<8x128xf32>
    %228 = vector.extract_strided_slice %141 {offsets = [24, 0], sizes = [8, 384], strides = [1, 1]} : vector<32x384xf32> to vector<8x384xf32>
    %cst_51 = arith.constant dense<0.000000e+00> : vector<8x384xf32>
    %229 = tpu.matmul %227, %136, %cst_51 {dimension_numbers = #tpu.dot_dimension_numbers<[1], [0], [0], [1], [0, 0, 1, 1], [], []>} : vector<8x128xf32>, vector<128x384xf32>, vector<8x384xf32> -> vector<8x384xf32>
    %230 = vector.extract_strided_slice %228 {offsets = [0, 0], sizes = [8, 128], strides = [1, 1]} : vector<8x384xf32> to vector<8x128xf32>
    %231 = vector.extract_strided_slice %229 {offsets = [0, 0], sizes = [8, 128], strides = [1, 1]} : vector<8x384xf32> to vector<8x128xf32>
    %232 = arith.addf %230, %231 : vector<8x128xf32>
    %233 = arith.negf %232 : vector<8x128xf32>
    %234 = math.exp %233 : vector<8x128xf32>
    %cst_52 = arith.constant 1.000000e+00 : f32
    %235 = vector.broadcast %cst_52 : f32 to vector<8x128xf32>
    %236 = arith.addf %235, %234 : vector<8x128xf32>
    %237 = arith.divf %235, %236 : vector<8x128xf32>
    %238 = vector.extract_strided_slice %228 {offsets = [0, 128], sizes = [8, 128], strides = [1, 1]} : vector<8x384xf32> to vector<8x128xf32>
    %239 = vector.extract_strided_slice %229 {offsets = [0, 128], sizes = [8, 128], strides = [1, 1]} : vector<8x384xf32> to vector<8x128xf32>
    %240 = arith.addf %238, %239 : vector<8x128xf32>
    %241 = arith.negf %240 : vector<8x128xf32>
    %242 = math.exp %241 : vector<8x128xf32>
    %cst_53 = arith.constant 1.000000e+00 : f32
    %243 = vector.broadcast %cst_53 : f32 to vector<8x128xf32>
    %244 = arith.addf %243, %242 : vector<8x128xf32>
    %245 = arith.divf %243, %244 : vector<8x128xf32>
    %246 = vector.extract_strided_slice %228 {offsets = [0, 256], sizes = [8, 128], strides = [1, 1]} : vector<8x384xf32> to vector<8x128xf32>
    %247 = vector.extract_strided_slice %229 {offsets = [0, 256], sizes = [8, 128], strides = [1, 1]} : vector<8x384xf32> to vector<8x128xf32>
    %248 = vector.broadcast %138 : vector<1x128xf32> to vector<8x128xf32>
    %249 = arith.addf %247, %248 : vector<8x128xf32>
    %250 = arith.mulf %237, %249 : vector<8x128xf32>
    %251 = arith.addf %246, %250 : vector<8x128xf32>
    %252 = math.tanh %251 : vector<8x128xf32>
    %253 = arith.subf %227, %252 : vector<8x128xf32>
    %254 = arith.mulf %245, %253 : vector<8x128xf32>
    %255 = arith.addf %252, %254 : vector<8x128xf32>
    %c1_54 = arith.constant 1 : index
    %c0_55 = arith.constant 0 : index
    %c0_56 = arith.constant 0 : index
    %256 = vector.load %arg15[%c1_54, %c0_55, %c0_56] : memref<2x8x128xf32, #tpu.memory_space<vmem>>, vector<1x8x128xf32>
    %257 = vector.shape_cast %256 : vector<1x8x128xf32> to vector<8x128xf32>
    %258 = vector.shape_cast %255 : vector<8x128xf32> to vector<1x8x128xf32>
    tpu.vector_store %arg15[%c1_54, %c0_55, %c0_56], %258 {strides = array<i32>} : memref<2x8x128xf32, #tpu.memory_space<vmem>>, vector<1x8x128xf32>,
    %c0_57 = arith.constant 0 : index
    %c0_58 = arith.constant 0 : index
    %259 = vector.load %arg12[%c0_57, %c0_58] : memref<128x128xf32, #tpu.memory_space<vmem>>, vector<128x128xf32>
    %cst_59 = arith.constant dense<0.000000e+00> : vector<8x128xf32>
    %260 = tpu.matmul %171, %259, %cst_59 {dimension_numbers = #tpu.dot_dimension_numbers<[1], [0], [0], [1], [0, 0, 1, 1], [], []>} : vector<8x128xf32>, vector<128x128xf32>, vector<8x128xf32> -> vector<8x128xf32>
    %c0_60 = arith.constant 0 : index
    %c0_61 = arith.constant 0 : index
    %261 = vector.load %arg13[%c0_60, %c0_61] : memref<1x128xf32, #tpu.memory_space<vmem>>, vector<1x128xf32>
    %262 = vector.broadcast %261 : vector<1x128xf32> to vector<8x128xf32>
    %263 = arith.addf %260, %262 : vector<8x128xf32>
    %cst_62 = arith.constant dense<0xFF800000> : vector<8xf32>
    %264 = vector.multi_reduction <maximumf>, %263, %cst_62 [1] : vector<8x128xf32> to vector<8xf32>
    %265 = vector.shape_cast %264 : vector<8xf32> to vector<8x1xf32>
    %266 = vector.broadcast %265 : vector<8x1xf32> to vector<8x128xf32>
    %267 = arith.subf %263, %266 : vector<8x128xf32>
    %268 = math.exp %267 : vector<8x128xf32>
    %cst_63 = arith.constant dense<0.000000e+00> : vector<8xf32>
    %269 = vector.multi_reduction <add>, %268, %cst_63 [1] : vector<8x128xf32> to vector<8xf32>
    %270 = vector.shape_cast %269 : vector<8xf32> to vector<8x1xf32>
    %271 = math.log %270 : vector<8x1xf32>
    %272 = arith.addf %265, %271 : vector<8x1xf32>
    %273 = vector.broadcast %272 : vector<8x1xf32> to vector<8x128xf32>
    %274 = arith.subf %263, %273 : vector<8x128xf32>
    %c0_64 = arith.constant 0 : index
    %c0_65 = arith.constant 0 : index
    %275 = vector.load %arg14[%c0_64, %c0_65] : memref<8x128xf32, #tpu.memory_space<vmem>>, vector<8x128xf32>
    tpu.vector_store %arg14[%c0_64, %c0_65], %274 {strides = array<i32>} : memref<8x128xf32, #tpu.memory_space<vmem>>, vector<8x128xf32>,
    return
  }
  func.func @transform_0(%arg0: i32) -> (i32, i32) {
    %c0_i32 = arith.constant 0 : i32
    %c0_i32_0 = arith.constant 0 : i32
    %c0_i32_1 = arith.constant 0 : i32
    return %c0_i32, %c0_i32_0 : i32, i32
  }
  func.func @transform_1(%arg0: i32) -> (i32, i32, i32) {
    %c0_i32 = arith.constant 0 : i32
    %c0_i32_0 = arith.constant 0 : i32
    %c0_i32_1 = arith.constant 0 : i32
    %c0_i32_2 = arith.constant 0 : i32
    return %c0_i32, %c0_i32_0, %c0_i32_1 : i32, i32, i32
  }
  func.func @transform_2(%arg0: i32) -> (i32, i32) {
    %c0_i32 = arith.constant 0 : i32
    %c0_i32_0 = arith.constant 0 : i32
    %c0_i32_1 = arith.constant 0 : i32
    return %c0_i32, %c0_i32_0 : i32, i32
  }
  func.func @transform_3(%arg0: i32) -> (i32, i32) {
    %c0_i32 = arith.constant 0 : i32
    %c0_i32_0 = arith.constant 0 : i32
    %c0_i32_1 = arith.constant 0 : i32
    return %c0_i32, %c0_i32_0 : i32, i32
  }
  func.func @transform_4(%arg0: i32) -> (i32, i32) {
    %c0_i32 = arith.constant 0 : i32
    %c0_i32_0 = arith.constant 0 : i32
    %c0_i32_1 = arith.constant 0 : i32
    return %c0_i32, %c0_i32_0 : i32, i32
  }
  func.func @transform_5(%arg0: i32) -> (i32, i32) {
    %c0_i32 = arith.constant 0 : i32
    %c0_i32_0 = arith.constant 0 : i32
    %c0_i32_1 = arith.constant 0 : i32
    return %c0_i32, %c0_i32_0 : i32, i32
  }
  func.func @transform_6(%arg0: i32) -> (i32, i32) {
    %c0_i32 = arith.constant 0 : i32
    %c0_i32_0 = arith.constant 0 : i32
    %c0_i32_1 = arith.constant 0 : i32
    return %c0_i32, %c0_i32_0 : i32, i32
  }
  func.func @transform_7(%arg0: i32) -> (i32, i32) {
    %c0_i32 = arith.constant 0 : i32
    %c0_i32_0 = arith.constant 0 : i32
    %c0_i32_1 = arith.constant 0 : i32
    return %c0_i32, %c0_i32_0 : i32, i32
  }
  func.func @transform_8(%arg0: i32) -> (i32, i32) {
    %c0_i32 = arith.constant 0 : i32
    %c0_i32_0 = arith.constant 0 : i32
    %c0_i32_1 = arith.constant 0 : i32
    return %c0_i32, %c0_i32_0 : i32, i32
  }
  func.func @transform_9(%arg0: i32) -> (i32, i32) {
    %c0_i32 = arith.constant 0 : i32
    %c0_i32_0 = arith.constant 0 : i32
    %c0_i32_1 = arith.constant 0 : i32
    return %c0_i32, %c0_i32_0 : i32, i32
  }
  func.func @transform_10(%arg0: i32) -> (i32, i32) {
    %c0_i32 = arith.constant 0 : i32
    %c0_i32_0 = arith.constant 0 : i32
    %c0_i32_1 = arith.constant 0 : i32
    return %c0_i32, %c0_i32_0 : i32, i32
  }
  func.func @transform_11(%arg0: i32) -> (i32, i32) {
    %c0_i32 = arith.constant 0 : i32
    %c0_i32_0 = arith.constant 0 : i32
    %c0_i32_1 = arith.constant 0 : i32
    return %c0_i32, %c0_i32_0 : i32, i32
  }
  func.func @transform_12(%arg0: i32) -> (i32, i32) {
    %c0_i32 = arith.constant 0 : i32
    %c0_i32_0 = arith.constant 0 : i32
    %c0_i32_1 = arith.constant 0 : i32
    return %c0_i32, %c0_i32_0 : i32, i32
  }
  func.func @transform_13(%arg0: i32) -> (i32, i32) {
    %c0_i32 = arith.constant 0 : i32
    %c0_i32_0 = arith.constant 0 : i32
    %c0_i32_1 = arith.constant 0 : i32
    return %c0_i32, %c0_i32_0 : i32, i32
  }
  func.func @transform_14(%arg0: i32) -> (i32, i32, i32) {
    %c0_i32 = arith.constant 0 : i32
    %c0_i32_0 = arith.constant 0 : i32
    %c0_i32_1 = arith.constant 0 : i32
    %c0_i32_2 = arith.constant 0 : i32
    return %c0_i32, %c0_i32_0, %c0_i32_1 : i32, i32, i32
  }
}

</mosaic_0001>

<bundles_post_ra>
// kernel: tpu_custom_call.1
= control target key start
LH: loop header
LB: loop body
LE: loop exit
PB: predicated region body
PF: predicated region fallthrough
CT: control target
= control target key end

     0   :  { %20 = vsyncpa [#allocation3], 0  ;;  %s4684_s0 = inlined_call_operand.vmem [shape: s32[32,1], index: 0, kind: input, shape index: {}]   ;;  %s4685_s1 = inlined_call_operand.vmem [shape: f32[2,8,128], index: 1, kind: input, shape index: {}]   ;;  %s4686_s2 = inlined_call_operand.hbm [shape: f32[128,128], index: 2, kind: input, shape index: {}]   ;;  %s4687_s3 = inlined_call_operand.hbm [shape: f32[128,384], index: 3, kind: input, shape index: {}]   ;;  %s4688_s4 = inlined_call_operand.hbm [shape: f32[128,384], index: 4, kind: input, shape index: {}]   ;;  %s4689_s5 = inlined_call_operand.vmem [shape: f32[1,384], index: 5, kind: input, shape index: {}]   ;;  %s4690_s6 = inlined_call_operand.vmem [shape: f32[1,128], index: 6, kind: input, shape index: {}]   ;;  %s4691_s7 = inlined_call_operand.hbm [shape: f32[128,384], index: 7, kind: input, shape index: {}]   ;;  %s4692_s8 = inlined_call_operand.hbm [shape: f32[128,384], index: 8, kind: input, shape index: {}]   ;;  %s4693_s9 = inlined_call_operand.vmem [shape: f32[1,384], index: 9, kind: input, shape index: {}]   ;;  %s4694_s10 = inlined_call_operand.vmem [shape: f32[1,128], index: 10, kind: input, shape index: {}]   ;;  %s4695_s11 = inlined_call_operand.hbm [shape: f32[128,128], index: 11, kind: input, shape index: {}]   ;;  %s4696_s12 = inlined_call_operand.vmem [shape: f32[1,128], index: 12, kind: input, shape index: {}]   ;;  %s4697_s13 = inlined_call_operand.hbm [shape: f32[8,128], index: 13, kind: output, shape index: {0}]   ;;  %s4698_s14 = inlined_call_operand.hbm [shape: f32[2,8,128], index: 14, kind: output, shape index: {1}]  }
   0x1   :  { %21 = vsyncpa [#allocation6], 0 }
   0x2   :  { %22 = vsyncpa [#allocation9], 0 }
   0x3   :  { %23 = vsyncpa [#allocation12], 0 }
   0x4   :  { %24 = vsyncpa [#allocation4], 0 }
   0x5   :  { %25 = vsyncpa [#allocation15], 0  ;;  %s3919_s29 = smov [#allocation5]   ;;  %s3731_s17 = scalar_lea.hbm %s4687_s3, 6144 }
   0x6   :  { %s47_s30 = sshll.u32 %s3919_s29, 4  ;;  %p3732_p0 = scmp.ne.s32.totalorder %s4687_s3, %s3731_s17  ;;  %s48_s30 = int_to_ptr.vmem [resolvable:$true] %s47_s30 }
   0x7   :  { %p3735_p1 = scmp.lt.u32.totalorder %s3731_s17, %s4687_s3 }
   0x9   :  { %p3737_p2 = pnand %p3735_p1, %p3732_p0 }
   0xb   :  { %3740 = shalt.err (!%p3737_p2)
}
   0xc   :  { %s3741_s22 = scalar_lea.vmem %s48_s30, 6144  ;;  %p3746_p4 = scmp.lt.s32.totalorder %s48_s30, %s48_s30 }
   0xd   :  { %p3742_p3 = scmp.ne.s32.totalorder %s48_s30, %s3741_s22  ;;  %p3747_p5 = scmp.lt.s32.totalorder %s3741_s22, %s3741_s22 }
   0xf   :  { %p3748_p6 = por %p3747_p5, %p3746_p4 }
  0x11   :  { %p3749_p7 = pnand %p3748_p6, %p3742_p3 }
  0x13   :  { %3752 = shalt.err (!%p3749_p7)
}
  0x14   :  { %s3920_s23 = smov 384   ;;  %s3921_s24 = smov 24  }
  0x15   :  { %53 = dma.hbm_to_vmem [thread:$0]  %s4687_s3, 6144, %s48_s30, [#allocation6], %s3920_s23, %s3920_s23, %s3921_s24  }
  0x16   :  { %s3922_s27 = smov [#allocation8]   ;;  %s3923_s29 = smov [#allocation2]  }
  0x17   :  { %s75_s28 = sshll.u32 %s3922_s27, 4  ;;  %s35_s15 = sshll.u32 %s3923_s29, 4  ;;  %s76_s28 = int_to_ptr.vmem [resolvable:$true] %s75_s28  ;;  %s36_s15 = int_to_ptr.vmem [resolvable:$true] %s35_s15 }
  0x18   :  { %s3753_s18 = scalar_lea.hbm %s4691_s7, 6144 }
  0x19   :  { %p3754_p8 = scmp.ne.s32.totalorder %s4691_s7, %s3753_s18  ;;  %p3757_p9 = scmp.lt.u32.totalorder %s3753_s18, %s4691_s7 }
  0x1b   :  { %p3759_p10 = pnand %p3757_p9, %p3754_p8 }
  0x1d   :  { %3762 = shalt.err (!%p3759_p10)
}
  0x1e   :  { %s3763_s3 = scalar_lea.vmem %s76_s28, 6144  ;;  %p3768_p12 = scmp.lt.s32.totalorder %s76_s28, %s76_s28 }
  0x1f   :  { %p3764_p11 = scmp.ne.s32.totalorder %s76_s28, %s3763_s3  ;;  %p3769_p13 = scmp.lt.s32.totalorder %s3763_s3, %s3763_s3 }
  0x21   :  { %p3770_p0 = por %p3769_p13, %p3768_p12 }
  0x23   :  { %p3771_p1 = pnand %p3770_p0, %p3764_p11 }
  0x25   :  { %3774 = shalt.err (!%p3771_p1)
}
  0x26   :  { %81 = dma.hbm_to_vmem [thread:$0]  %s4691_s7, 6144, %s76_s28, [#allocation9], %s3920_s23, %s3920_s23, %s3921_s24  }
  0x27   :  { %s3775_s29 = scalar_lea.hbm %s4686_s2, 2048 }
  0x28   :  { %p3776_p2 = scmp.ne.s32.totalorder %s4686_s2, %s3775_s29  ;;  %p3779_p3 = scmp.lt.u32.totalorder %s3775_s29, %s4686_s2 }
  0x2a   :  { %p3781_p4 = pnand %p3779_p3, %p3776_p2 }
  0x2c   :  { %3784 = shalt.err (!%p3781_p4)
}
  0x2d   :  { %s3785_s20 = scalar_lea.vmem %s36_s15, 2048  ;;  %p3790_p6 = scmp.lt.s32.totalorder %s36_s15, %s36_s15 }
  0x2e   :  { %p3786_p5 = scmp.ne.s32.totalorder %s36_s15, %s3785_s20  ;;  %p3791_p7 = scmp.lt.s32.totalorder %s3785_s20, %s3785_s20 }
  0x30   :  { %p3792_p8 = por %p3791_p7, %p3790_p6 }
  0x32   :  { %p3793_p9 = pnand %p3792_p8, %p3786_p5 }
  0x34   :  { %3796 = shalt.err (!%p3793_p9)
}
  0x35   :  { %s3924_s7 = smov 128   ;;  %s3925_s28 = smov 8  }
  0x36   :  { %41 = dma.hbm_to_vmem [thread:$0]  %s4686_s2, 2048, %s36_s15, [#allocation3], %s3924_s7, %s3924_s7, %s3925_s28  }
  0x37   :  { %s3926_s3 = smov [#allocation7]   ;;  %s3927_s25 = smov [#allocation10]  }
  0x38   :  { %s59_s30 = sshll.u32 %s3926_s3, 4  ;;  %s87_s26 = sshll.u32 %s3927_s25, 4  ;;  %s60_s30 = int_to_ptr.vmem [resolvable:$true] %s59_s30  ;;  %s88_s26 = int_to_ptr.vmem [resolvable:$true] %s87_s26 }
  0x39   :  { %s3797_s16 = scalar_lea.hbm %s4688_s4, 6144 }
  0x3a   :  { %p3798_p10 = scmp.ne.s32.totalorder %s4688_s4, %s3797_s16  ;;  %p3801_p11 = scmp.lt.u32.totalorder %s3797_s16, %s4688_s4 }
  0x3c   :  { %p3803_p12 = pnand %p3801_p11, %p3798_p10 }
  0x3e   :  { %3806 = shalt.err (!%p3803_p12)
}
  0x3f   :  { %s3807_s2 = scalar_lea.vmem %s60_s30, 6144  ;;  %p3812_p0 = scmp.lt.s32.totalorder %s60_s30, %s60_s30 }
  0x40   :  { %p3808_p13 = scmp.ne.s32.totalorder %s60_s30, %s3807_s2  ;;  %p3813_p1 = scmp.lt.s32.totalorder %s3807_s2, %s3807_s2 }
  0x42   :  { %p3814_p2 = por %p3813_p1, %p3812_p0 }
  0x44   :  { %p3815_p3 = pnand %p3814_p2, %p3808_p13 }
  0x46   :  { %3818 = shalt.err (!%p3815_p3)
}
  0x47   :  { %65 = dma.hbm_to_vmem [thread:$0]  %s4688_s4, 6144, %s60_s30, [#allocation6], %s3920_s23, %s3920_s23, %s3921_s24  }
  0x48   :  { %s3819_s25 = scalar_lea.hbm %s4692_s8, 6144 }
  0x49   :  { %p3820_p4 = scmp.ne.s32.totalorder %s4692_s8, %s3819_s25  ;;  %p3823_p5 = scmp.lt.u32.totalorder %s3819_s25, %s4692_s8 }
  0x4b   :  { %p3825_p6 = pnand %p3823_p5, %p3820_p4 }
  0x4d   :  { %3828 = shalt.err (!%p3825_p6)
}
  0x4e   :  { %s3829_s18 = scalar_lea.vmem %s88_s26, 6144  ;;  %p3834_p8 = scmp.lt.s32.totalorder %s88_s26, %s88_s26 }
  0x4f   :  { %p3830_p7 = scmp.ne.s32.totalorder %s88_s26, %s3829_s18  ;;  %p3835_p9 = scmp.lt.s32.totalorder %s3829_s18, %s3829_s18 }
  0x51   :  { %p3836_p10 = por %p3835_p9, %p3834_p8 }
  0x53   :  { %p3837_p11 = pnand %p3836_p10, %p3830_p7 }
  0x55   :  { %3840 = shalt.err (!%p3837_p11)
}
  0x56   :  { %93 = dma.hbm_to_vmem [thread:$0]  %s4692_s8, 6144, %s88_s26, [#allocation9], %s3920_s23, %s3920_s23, %s3921_s24  }
  0x57   :  { %s3928_s19 = smov [#allocation11]   ;;  %s3841_s21 = scalar_lea.hbm %s4695_s11, 2048 }
  0x58   :  { %s103_s20 = sshll.u32 %s3928_s19, 4  ;;  %p3842_p12 = scmp.ne.s32.totalorder %s4695_s11, %s3841_s21  ;;  %s104_s20 = int_to_ptr.vmem [resolvable:$true] %s103_s20 }
  0x59   :  { %p3845_p13 = scmp.lt.u32.totalorder %s3841_s21, %s4695_s11 }
  0x5b   :  { %p3847_p0 = pnand %p3845_p13, %p3842_p12 }
  0x5d   :  { %3850 = shalt.err (!%p3847_p0)
}
  0x5e   :  { %s3851_s29 = scalar_lea.vmem %s104_s20, 2048  ;;  %p3856_p2 = scmp.lt.s32.totalorder %s104_s20, %s104_s20 }
  0x5f   :  { %p3852_p1 = scmp.ne.s32.totalorder %s104_s20, %s3851_s29  ;;  %p3857_p3 = scmp.lt.s32.totalorder %s3851_s29, %s3851_s29 }
  0x61   :  { %p3858_p4 = por %p3857_p3, %p3856_p2 }
  0x63   :  { %p3859_p5 = pnand %p3858_p4, %p3852_p1 }
  0x65   :  { %3862 = shalt.err (!%p3859_p5)
}
  0x66   :  { %109 = dma.hbm_to_vmem [thread:$0]  %s4695_s11, 2048, %s104_s20, [#allocation12], %s3924_s7, %s3924_s7, %s3925_s28  }
  0x67   :  { %3907 = dma.done.wait [#allocation3], 2048  }
  0x68   :  { %3908 = vsyncadd [#allocation3], 4294965248 }
  0x69   :  { %3909 = dma.done.wait [#allocation6], 12288  }
  0x6a   :  { %3910 = vsyncadd [#allocation6], 4294955008 }
  0x6b   :  { %3911 = dma.done.wait [#allocation9], 12288  }
  0x6c   :  { %3912 = vsyncadd [#allocation9], 4294955008 }
  0x6d   :  { %3913 = dma.done.wait [#allocation12], 2048  }
  0x6e   :  { %3914 = vsyncadd [#allocation12], 4294965248  ;;  %v3929_v0 = vmov 0   ;;  %v130_v1 = vld [vmem:[%s4684_s0] sm:$0xff]  ;;  %v132_v2 = vld [vmem:[%s4684_s0 + $0x10] sm:$0xff]  ;;  %vm3933_vm4 = vmmov 0  }
  0x6f   :  { %3645 = vset.pattern.permute.xlu0 %v3929_v0  ;;  %3646 = vset.pattern.permute.xlu1 %v3929_v0  ;;  %v131_v3 = vld [vmem:[%s4684_s0 + $0x8] sm:$0xff]  ;;  %v160_v4 = vld [vmem:[#allocation2] sm:$0xff]  ;;  %v133_v6 = vld [vmem:[%s4684_s0 + $0x18] sm:$0xff] }
  0x70   :  { %137 = vperm.xlu0 %3645, %v130_v1   ;;  %143 = vperm.xlu1 %3646, %v132_v2   ;;  %v161_v5 = vld [vmem:[#allocation2 + $0x8] sm:$0xff]  ;;  %v162_v8 = vld [vmem:[#allocation2 + $0x10] sm:$0xff]  ;;  %v163_v9 = vld [vmem:[#allocation2 + $0x18] sm:$0xff] }
  0x71   :  { %v2964_v7 = vpack.c.bf16 %v161_v5, %v160_v4  ;;  %v2968_v10 = vpack.c.bf16 %v163_v9, %v162_v8  ;;  %v164_v11 = vld [vmem:[#allocation2 + $0x20] sm:$0xff]  ;;  %v165_v12 = vld [vmem:[#allocation2 + $0x28] sm:$0xff]  ;;  %v166_v14 = vld [vmem:[#allocation2 + $0x30] sm:$0xff] }
  0x72   :  { %v2972_v13 = vpack.c.bf16 %v165_v12, %v164_v11  ;;  %v167_v15 = vld [vmem:[#allocation2 + $0x38] sm:$0xff]  ;;  %v266_v16 = vld [vmem:[#allocation5 + $0x8] sm:$0xff]  ;;  %v269_v17 = vld [vmem:[#allocation5 + $0x20] sm:$0xff] }
  0x73   :  { %2965 = vmatprep.subr.bf16.mxu0 %v2964_v7  ;;  %v265_v18 = vld [vmem:[#allocation5] sm:$0xff]  ;;  %v2976_v19 = vpack.c.bf16 %v167_v15, %v166_v14  ;;  %v169_v21 = vld [vmem:[#allocation2 + $0x48] sm:$0xff]  ;;  %v2996_v22 = vpack.c.bf16 %v269_v17, %v266_v16  ;;  %v268_v23 = vld [vmem:[#allocation5 + $0x18] sm:$0xff] }
  0x74   :  { %140 = vperm.xlu0 %3645, %v131_v3   ;;  %146 = vperm.xlu1 %3646, %v133_v6   ;;  %v168_v20 = vld [vmem:[#allocation2 + $0x40] sm:$0xff]  ;;  %v2998_v24 = vpack.c.bf16 %v268_v23, %v265_v18  ;;  %v272_v25 = vld [vmem:[#allocation5 + $0x38] sm:$0xff]  ;;  %v275_v26 = vld [vmem:[#allocation5 + $0x50] sm:$0xff] }
  0x75   :  { %2967 = vmatpush3.bf16.msra.mxu0 %v2964_v7  ;;  %v271_v27 = vld [vmem:[#allocation5 + $0x30] sm:$0xff]  ;;  %2997 = vmatprep.subr.bf16.mxu1 %v2996_v22  ;;  %v3000_v28 = vpack.c.bf16 %v275_v26, %v272_v25  ;;  %v274_v29 = vld [vmem:[#allocation5 + $0x48] sm:$0xff]  ;;  %v281_v32 = vld [vmem:[#allocation5 + $0x80] sm:$0xff]  ;;  %v2980_v33 = vpack.c.bf16 %v169_v21, %v168_v20 }
  0x76   :  { %2969 = vmatprep.subr.bf16.mxu0 %v2968_v10  ;;  %2999 = vmatpush1.bf16.msra.mxu1 %v2998_v24  ;;  %v3002_v30 = vpack.c.bf16 %v274_v29, %v271_v27  ;;  %v278_v31 = vld [vmem:[#allocation5 + $0x68] sm:$0xff]  ;;  %v170_v34 = vld [vmem:[#allocation2 + $0x50] sm:$0xff]  ;;  %v277_v36 = vld [vmem:[#allocation5 + $0x60] sm:$0xff] }
  0x77   :  { %3001 = vmatprep.subr.bf16.mxu1 %v3000_v28  ;;  %v3004_v35 = vpack.c.bf16 %v281_v32, %v278_v31  ;;  %v280_v37 = vld [vmem:[#allocation5 + $0x78] sm:$0xff]  ;;  %v287_v40 = vld [vmem:[#allocation5 + $0xb0] sm:$0xff]  ;;  %v172_v43 = vld [vmem:[#allocation2 + $0x60] sm:$0xff] }
  0x78   :  { %v171_v38 = vld [vmem:[#allocation2 + $0x58] sm:$0xff]  ;;  %v3006_v41 = vpack.c.bf16 %v280_v37, %v277_v36  ;;  %v283_v45 = vld [vmem:[#allocation5 + $0x90] sm:$0xff]  ;;  %v286_v46 = vld [vmem:[#allocation5 + $0xa8] sm:$0xff] }
  0x79   :  { %2971 = vmatpush3.bf16.msra.mxu0 %v2968_v10  ;;  %v284_v39 = vld [vmem:[#allocation5 + $0x98] sm:$0xff]  ;;  %v2984_v42 = vpack.c.bf16 %v171_v38, %v170_v34  ;;  %v173_v47 = vld [vmem:[#allocation2 + $0x68] sm:$0xff]  ;;  %v293_v49 = vld [vmem:[#allocation5 + $0xe0] sm:$0xff]  ;;  %v3010_v50 = vpack.c.bf16 %v286_v46, %v283_v45 }
  0x7a   :  { %2973 = vmatprep.subr.bf16.mxu0 %v2972_v13  ;;  %3003 = vmatpush1.bf16.msra.mxu1 %v3002_v30  ;;  %v3008_v44 = vpack.c.bf16 %v287_v40, %v284_v39  ;;  %v290_v48 = vld [vmem:[#allocation5 + $0xc8] sm:$0xff]  ;;  %v2988_v51 = vpack.c.bf16 %v173_v47, %v172_v43  ;;  %v174_v52 = vld [vmem:[#allocation2 + $0x70] sm:$0xff]  ;;  %v289_v54 = vld [vmem:[#allocation5 + $0xc0] sm:$0xff]  ;;  %v3931_v47 = vmov 0.0  }
  0x7b   :  { %3005 = vmatprep.subr.bf16.mxu1 %v3004_v35  ;;  %v3012_v53 = vpack.c.bf16 %v293_v49, %v290_v48  ;;  %v292_v55 = vld [vmem:[#allocation5 + $0xd8] sm:$0xff]  ;;  %v299_v58 = vld [vmem:[#allocation5 + $0x110] sm:$0xff]  ;;  %v298_v0 = vld [vmem:[#allocation5 + $0x108] sm:$0xff]  ;;  %443 = vmatprep.mubr.f32.mxu1 %v3931_v47  ;;  %v3932_v48 = vmov 0.0|0.0  }
  0x7c   :  { %v175_v56 = vld [vmem:[#allocation2 + $0x78] sm:$0xff]  ;;  %v3014_v59 = vpack.c.bf16 %v292_v55, %v289_v54  ;;  %v267_v61 = vld [vmem:[#allocation5 + $0x10] sm:$0xff]  ;;  %v270_v1 = vld [vmem:[#allocation5 + $0x28] sm:$0xff] }
  0x7d   :  { %2975 = vmatpush3.bf16.msra.mxu0 %v2972_v13  ;;  %v296_v57 = vld [vmem:[#allocation5 + $0xf8] sm:$0xff]  ;;  %v2992_v60 = vpack.c.bf16 %v175_v56, %v174_v52  ;;  %v295_v63 = vld [vmem:[#allocation5 + $0xf0] sm:$0xff]  ;;  %v302_v2 = vld [vmem:[#allocation5 + $0x128] sm:$0xff]  ;;  %v3028_v5 = vpack.c.bf16 %v270_v1, %v267_v61  ;;  %v134_v13 = vlaneseq }
  0x7e   :  { %2977 = vmatprep.subr.bf16.mxu0 %v2976_v19  ;;  %3007 = vmatpush1.bf16.msra.mxu1 %v3006_v41  ;;  %v3016_v62 = vpack.c.bf16 %v299_v58, %v296_v57  ;;  %v305_v3 = vld [vmem:[#allocation5 + $0x140] sm:$0xff]  ;;  %v3018_v4 = vpack.c.bf16 %v298_v0, %v295_v63  ;;  %v304_v8 = vld [vmem:[#allocation5 + $0x138] sm:$0xff]  ;;  %v311_v10 = vld [vmem:[#allocation5 + $0x170] sm:$0xff] }
  0x7f   :  { %3009 = vmatprep.subr.bf16.mxu1 %v3008_v44  ;;  %v3020_v6 = vpack.c.bf16 %v305_v3, %v302_v2  ;;  %v301_v7 = vld [vmem:[#allocation5 + $0x120] sm:$0xff]  ;;  %v308_v9 = vld [vmem:[#allocation5 + $0x158] sm:$0xff]  ;;  %v135_v14 = vand.u32 127, %v134_v13  ;;  %v279_v23 = vld [vmem:[#allocation5 + $0x70] sm:$0xff] }
  0x80   :  { %v3022_v11 = vpack.c.bf16 %v304_v8, %v301_v7  ;;  %v3024_v12 = vpack.c.bf16 %v311_v10, %v308_v9  ;;  %v273_v17 = vld [vmem:[#allocation5 + $0x40] sm:$0xff]  ;;  %v276_v18 = vld [vmem:[#allocation5 + $0x58] sm:$0xff]  ;;  %v282_v24 = vld [vmem:[#allocation5 + $0x88] sm:$0xff] }
  0x81   :  { %2979 = vmatpush3.bf16.msra.mxu0 %v2976_v19  ;;  %v3930_v19 = vmov 1.0   ;;  %v3032_v22 = vpack.c.bf16 %v276_v18, %v273_v17  ;;  %v3036_v25 = vpack.c.bf16 %v282_v24, %v279_v23  ;;  %v285_v26 = vld [vmem:[#allocation5 + $0xa0] sm:$0xff]  ;;  %v288_v27 = vld [vmem:[#allocation5 + $0xb8] sm:$0xff]  ;;  %v291_v29 = vld [vmem:[#allocation5 + $0xd0] sm:$0xff] }
  0x82   :  { %2981 = vmatprep.subr.bf16.mxu0 %v2980_v33  ;;  %3011 = vmatpush1.bf16.msra.mxu1 %v3010_v50  ;;  %v3040_v28 = vpack.c.bf16 %v288_v27, %v285_v26  ;;  %v294_v30 = vld [vmem:[#allocation5 + $0xe8] sm:$0xff]  ;;  %v297_v32 = vld [vmem:[#allocation5 + $0x100] sm:$0xff]  ;;  %v303_v35 = vld [vmem:[#allocation5 + $0x130] sm:$0xff] }
  0x83   :  { %3013 = vmatprep.subr.bf16.mxu1 %v3012_v53  ;;  %v3044_v31 = vpack.c.bf16 %v294_v30, %v291_v29  ;;  %v306_v36 = vld [vmem:[#allocation5 + $0x148] sm:$0xff]  ;;  %v307_v38 = vld [vmem:[#allocation5 + $0x150] sm:$0xff]  ;;  %v309_v41 = vld [vmem:[#allocation5 + $0x160] sm:$0xff] }
  0x84   :  { %v3052_v37 = vpack.c.bf16 %v306_v36, %v303_v35  ;;  %v310_v39 = vld [vmem:[#allocation5 + $0x168] sm:$0xff]  ;;  %v317_v45 = vld [vmem:[#allocation7 + $0x20] sm:$0xff]  ;;  %v316_v50 = vld [vmem:[#allocation7 + $0x18] sm:$0xff] }
  0x85   :  { %2983 = vmatpush3.bf16.msra.mxu0 %v2980_v33  ;;  %v300_v33 = vld [vmem:[#allocation5 + $0x118] sm:$0xff]  ;;  %v3026_v40 = vpack.c.bf16 %v310_v39, %v307_v38  ;;  %v314_v44 = vld [vmem:[#allocation7 + $0x8] sm:$0xff]  ;;  %v313_v49 = vld [vmem:[#allocation7] sm:$0xff] }
  0x86   :  { %2985 = vmatprep.subr.bf16.mxu0 %v2984_v42  ;;  %3015 = vmatpush1.bf16.msra.mxu1 %v3014_v59  ;;  %v3048_v34 = vpack.c.bf16 %v300_v33, %v297_v32  ;;  %v4114_v46 = vpack.c.bf16 %v317_v45, %v314_v44  ;;  %v323_v52 = vld [vmem:[#allocation7 + $0x50] sm:$0xff]  ;;  %v318_v55 = vld [vmem:[#allocation7 + $0x28] sm:$0xff]  ;;  %v4119_v57 = vpack.c.bf16 %v316_v50, %v313_v49  ;;  %v329_v0 = vld [vmem:[#allocation7 + $0x80] sm:$0xff] }
  0x87   :  { %3017 = vmatprep.subr.bf16.mxu1 %v3016_v62  ;;  %v315_v54 = vld [vmem:[#allocation7 + $0x10] sm:$0xff]  ;;  %v322_v61 = vld [vmem:[#allocation7 + $0x48] sm:$0xff]  ;;  %v325_v8 = vld [vmem:[#allocation7 + $0x60] sm:$0xff] }
  0x88   :  { %v326_v63 = vld [vmem:[#allocation7 + $0x68] sm:$0xff]  ;;  %v4123_v1 = vpack.c.bf16 %v318_v55, %v315_v54  ;;  %v328_v9 = vld [vmem:[#allocation7 + $0x78] sm:$0xff]  ;;  %v327_v17 = vld [vmem:[#allocation7 + $0x70] sm:$0xff] }
  0x89   :  { %2987 = vmatpush3.bf16.msra.mxu0 %v2984_v42  ;;  %v312_v42 = vld [vmem:[#allocation5 + $0x178] sm:$0xff]  ;;  %v4130_v7 = vpack.c.bf16 %v329_v0, %v326_v63  ;;  %v330_v18 = vld [vmem:[#allocation7 + $0x88] sm:$0xff]  ;;  %v341_v23 = vld [vmem:[#allocation7 + $0xe0] sm:$0xff] }
  0x8a   :  { %2989 = vmatprep.subr.bf16.mxu0 %v2988_v51  ;;  %3019 = vmatpush1.bf16.msra.mxu1 %v3018_v4  ;;  %v3056_v43 = vpack.c.bf16 %v312_v42, %v309_v41  ;;  %v4146_v24 = vpack.c.bf16 %v330_v18, %v327_v17  ;;  %v333_v26 = vld [vmem:[#allocation7 + $0xa0] sm:$0xff]  ;;  %v336_v27 = vld [vmem:[#allocation7 + $0xb8] sm:$0xff]  ;;  %v347_v32 = vld [vmem:[#allocation7 + $0x110] sm:$0xff] }
  0x8b   :  { %3021 = vmatprep.subr.bf16.mxu1 %v3020_v6  ;;  %v324_v6 = vld [vmem:[#allocation7 + $0x58] sm:$0xff]  ;;  %v337_v29 = vld [vmem:[#allocation7 + $0xc0] sm:$0xff]  ;;  %v4157_v33 = vpack.c.bf16 %v336_v27, %v333_v26  ;;  %v339_v35 = vld [vmem:[#allocation7 + $0xd0] sm:$0xff] }
  0x8c   :  { %v340_v30 = vld [vmem:[#allocation7 + $0xd8] sm:$0xff]  ;;  %v342_v36 = vld [vmem:[#allocation7 + $0xe8] sm:$0xff]  ;;  %v343_v38 = vld [vmem:[#allocation7 + $0xf0] sm:$0xff] }
  0x8d   :  { %2991 = vmatpush3.bf16.msra.mxu0 %v2988_v51  ;;  %v320_v51 = vld [vmem:[#allocation7 + $0x38] sm:$0xff]  ;;  %v346_v39 = vld [vmem:[#allocation7 + $0x108] sm:$0xff]  ;;  %v353_v41 = vld [vmem:[#allocation7 + $0x140] sm:$0xff]  ;;  %v4168_v42 = vpack.c.bf16 %v342_v36, %v339_v35 }
  0x8e   :  { %2993 = vmatprep.subr.bf16.mxu0 %v2992_v60  ;;  %3023 = vmatpush1.bf16.msra.mxu1 %v3022_v11  ;;  %v4121_v59 = vpack.c.bf16 %v323_v52, %v320_v51  ;;  %v345_v44 = vld [vmem:[#allocation7 + $0x100] sm:$0xff]  ;;  %v348_v45 = vld [vmem:[#allocation7 + $0x118] sm:$0xff] }
  0x8f   :  { %3025 = vmatprep.subr.bf16.mxu1 %v3024_v12  ;;  %v332_v12 = vld [vmem:[#allocation7 + $0x98] sm:$0xff]  ;;  %v349_v50 = vld [vmem:[#allocation7 + $0x120] sm:$0xff]  ;;  %v4178_v54 = vpack.c.bf16 %v348_v45, %v345_v44 }
  0x90   :  { %v352_v51 = vld [vmem:[#allocation7 + $0x138] sm:$0xff]  ;;  %v4275_v44 = vld [vmem:[%s4690_s6] ss:$0 sm:$0xff] }
  0x91   :  { %2995 = vmatpush3.bf16.msra.mxu0 %v2992_v60  ;;  %v319_v60 = vld [vmem:[#allocation7 + $0x30] sm:$0xff]  ;;  %v356_v52 = vld [vmem:[#allocation7 + $0x158] sm:$0xff]  ;;  %v4181_v55 = vpack.c.bf16 %v352_v51, %v349_v50 }
  0x92   :  { %3029 = vmatprep.subr.bf16.mxu0 %v3028_v5  ;;  %3027 = vmatpush1.bf16.msra.mxu1 %v3026_v40  ;;  %v4126_v3 = vpack.c.bf16 %v322_v61, %v319_v60  ;;  %v350_v40 = vld [vmem:[#allocation7 + $0x128] sm:$0xff]  ;;  %v355_v61 = vld [vmem:[#allocation7 + $0x150] sm:$0xff] }
  0x93   :  { %3061 = vmatprep.subr.bf16.mxu1 %v4114_v46  ;;  %v4175_v49 = vpack.c.bf16 %v353_v41, %v350_v40 }
  0xef   :  { %v138_v15 = vpop.permute.xlu0 %137  ;;  %v144_v16 = vpop.permute.xlu1 %143 }
  0xf0   :  { %vm148_vm0 = vcmp.eq.s32.totalorder %v135_v14, %v138_v15  ;;  %vm150_vm1 = vcmp.eq.s32.totalorder %v135_v14, %v144_v16  ;;  %v4136_v16 = vpack.c.bf16 %v328_v9, %v325_v8  ;;  %v4246_v8 = vshrl.u32 %v134_v13, 7 }
  0xf1   :  { %2567 = vmatprep.mubr.msk.f32.mxu0 %vm148_vm0, %v3930_v19 }
  0xf2   :  { %v374_v9 = vsub.s32 2, %v4246_v8  ;;  %v366_v13 = vsub.s32 0, %v4246_v8 }
  0xf3   :  { %v141_v20 = vpop.permute.xlu0 %140  ;;  %v147_v21 = vpop.permute.xlu1 %146 }
  0xf4   :  { %vm149_vm2 = vcmp.eq.s32.totalorder %v135_v14, %v141_v20  ;;  %vm151_vm3 = vcmp.eq.s32.totalorder %v135_v14, %v147_v21  ;;  %v335_v14 = vld [vmem:[#allocation7 + $0xb0] sm:$0xff]  ;;  %v334_v21 = vld [vmem:[#allocation7 + $0xa8] sm:$0xff] }
  0xf5   :  { %2568 = vmatmul.mubr.msk.f32.vlgmr.msra.gmra.mrb[0].mxu0 %vm149_vm2, %v3930_v19  ;;  %v331_v20 = vld [vmem:[#allocation7 + $0x90] sm:$0xff] }
  0xf6   :  { %2570 = vmatprep.mubr.msk.f32.mxu0 %vm150_vm1, %v3930_v19  ;;  %3031 = vmatpush3.bf16.msra.mxu0 %v3028_v5  ;;  %v321_v5 = vld [vmem:[#allocation7 + $0x40] sm:$0xff] }
  0xf7   :  { %3033 = vmatprep.subr.bf16.mxu0 %v3032_v22  ;;  %v4133_v15 = vpack.c.bf16 %v324_v6, %v321_v5  ;;  %v4202_v6 = vld [vmem:[%s4685_s1] sm:$0xff] }
  0xf9   :  { %2571 = vmatmul.mubr.msk.f32.gmra.mrb[2].mxu0 %vm151_vm3, %v3930_v19  ;;  %v4140_v19 = vpack.c.bf16 %v335_v14, %v332_v12 }
  0xfa   :  { %3035 = vmatpush3.bf16.msra.mxu0 %v3032_v22  ;;  %v338_v22 = vld [vmem:[#allocation7 + $0xc8] sm:$0xff] }
  0xfb   :  { %3037 = vmatprep.subr.bf16.mxu0 %v3036_v25 }
  0xfe   :  { %3039 = vmatpush3.bf16.msra.mxu0 %v3036_v25  ;;  %v4149_v25 = vpack.c.bf16 %v334_v21, %v331_v20 }
  0xff   :  { %3041 = vmatprep.subr.bf16.mxu0 %v3040_v28 }
 0x102   :  { %3043 = vmatpush3.bf16.msra.mxu0 %v3040_v28  ;;  %v4153_v28 = vpack.c.bf16 %v341_v23, %v338_v22 }
 0x103   :  { %3045 = vmatprep.subr.bf16.mxu0 %v3044_v31 }
 0x106   :  { %3047 = vmatpush3.bf16.msra.mxu0 %v3044_v31  ;;  %v344_v31 = vld [vmem:[#allocation7 + $0xf8] sm:$0xff] }
 0x107   :  { %3049 = vmatprep.subr.bf16.mxu0 %v3048_v34 }
 0x10a   :  { %3051 = vmatpush3.bf16.msra.mxu0 %v3048_v34  ;;  %v4160_v34 = vpack.c.bf16 %v340_v30, %v337_v29  ;;  %v370_v29 = vsub.s32 1, %v4246_v8 }
 0x10b   :  { %3053 = vmatprep.subr.bf16.mxu0 %v3052_v37 }
 0x10e   :  { %3055 = vmatpush3.bf16.msra.mxu0 %v3052_v37  ;;  %v4164_v37 = vpack.c.bf16 %v347_v32, %v344_v31 }
 0x10f   :  { %3057 = vmatprep.subr.bf16.mxu0 %v3056_v43 }
 0x112   :  { %3059 = vmatpush3.bf16.msra.mxu0 %v3056_v43  ;;  %v4171_v43 = vpack.c.bf16 %v346_v39, %v343_v38 }
 0x113   :  { %3092 = vmatprep.subr.bf16.mxu0 %v3932_v48 }
 0x1c8   :  { %v2569_v53 = vpop.f32.mrb[0].mxu0 }
 0x1c9   :  { %v242_v56 = vpop.f32.mrb[1].mxu0  ;;  %v262_v62 = vmax.f32 %v2569_v53, 0.0  ;;  %v359_v53 = vld [vmem:[#allocation7 + $0x170] sm:$0xff] }
 0x1ca   :  { %v261_v58 = vmax.f32 %v242_v56, 0.0  ;;  %v351_v56 = vld [vmem:[#allocation7 + $0x130] sm:$0xff]  ;;  %v4185_v60 = vpack.c.bf16 %v359_v53, %v356_v52 }
 0x1cc   :  { %444 = vmatmul.mubr.f32.vlgmr.msra.gmra.mrb[0].mxu1 %v261_v58  ;;  %2605 = vmatprep.mubr.f32.mxu0 %v261_v58  ;;  %v2572_v2 = vpop.f32.mrb[2].mxu0  ;;  %v354_v58 = vld [vmem:[#allocation7 + $0x148] sm:$0xff] }
 0x1cd   :  { %3063 = vmatpush1.bf16.msra.mxu1 %v4119_v57  ;;  %2606 = vmatmul.mubr.f32.vlgmr.msra.gmra.mrb[4].mxu0 %v262_v62  ;;  %v252_v4 = vpop.f32.mrb[3].mxu0  ;;  %v264_v10 = vmax.f32 %v2572_v2, 0.0  ;;  %v4188_v63 = vpack.c.bf16 %v354_v58, %v351_v56  ;;  %v357_v2 = vld [vmem:[#allocation7 + $0x160] sm:$0xff] }
 0x1ce   :  { %449 = vmatprep.mubr.f32.mxu1 %v3931_v47  ;;  %3065 = vmatprep.subr.bf16.mxu1 %v4121_v59  ;;  %v263_v11 = vmax.f32 %v252_v4, 0.0  ;;  %v360_v4 = vld [vmem:[#allocation7 + $0x178] sm:$0xff] }
 0x1cf   :  { %3094 = vmatpush3.bf16.msra.mxu0 %v4123_v1  ;;  %v4196_v5 = vpack.c.bf16 %v360_v4, %v357_v2 }
 0x1d0   :  { %450 = vmatmul.mubr.f32.gmra.mrb[2].mxu1 %v262_v62  ;;  %2608 = vmatprep.mubr.f32.mxu0 %v263_v11  ;;  %v358_v62 = vld [vmem:[#allocation7 + $0x168] sm:$0xff] }
 0x1d1   :  { %3067 = vmatpush1.bf16.msra.mxu1 %v4126_v3  ;;  %455 = vmatprep.mubr.f32.mxu1 %v3931_v47  ;;  %v4191_v0 = vpack.c.bf16 %v358_v62, %v355_v61 }
 0x1d2   :  { %3069 = vmatprep.subr.bf16.mxu1 %v4130_v7  ;;  %2609 = vmatmul.mubr.f32.gmra.mrb[6].mxu0 %v264_v10 }
 0x1d3   :  { %3095 = vmatprep.subr.bf16.mxu0 %v3932_v48  ;;  %2643 = vmatprep.mubr.msk.f32.mxu0 %vm3933_vm4, %v3931_v47 }
 0x1d4   :  { %456 = vmatmul.mubr.f32.gmra.mrb[4].mxu1 %v263_v11  ;;  %3097 = vmatpush3.bf16.msra.mxu0 %v4133_v15 }
 0x1d5   :  { %3071 = vmatpush1.bf16.msra.mxu1 %v4136_v16  ;;  %461 = vmatprep.mubr.f32.mxu1 %v3931_v47 }
 0x1d6   :  { %3073 = vmatprep.subr.bf16.mxu1 %v4140_v19  ;;  %3098 = vmatprep.subr.bf16.mxu0 %v3932_v48 }
 0x1d8   :  { %462 = vmatmul.mubr.f32.gmra.mrb[6].mxu1 %v264_v10  ;;  %3100 = vmatpush3.bf16.msra.mxu0 %v4146_v24  ;;  %v361_v10 = vld [vmem:[%s4689_s5] sm:$0x7] }
 0x1d9   :  { %3075 = vmatpush1.bf16.msra.mxu1 %v4149_v25  ;;  %618 = vmatprep.mubr.f32.mxu1 %v3931_v47  ;;  %v375_v11 = vrot.slane %v361_v10, %v374_v9  ;;  %v4263_v23 = vrot.slane %v361_v10, %v366_v13  ;;  %v4269_v36 = vrot.slane %v361_v10, %v370_v29 }
 0x1da   :  { %3077 = vmatprep.subr.bf16.mxu1 %v4153_v28  ;;  %3101 = vmatprep.subr.bf16.mxu0 %v3932_v48 }
 0x1dc   :  { %3103 = vmatpush3.bf16.msra.mxu0 %v4157_v33 }
 0x1dd   :  { %3079 = vmatpush1.bf16.msra.mxu1 %v4160_v34  ;;  %3104 = vmatprep.subr.bf16.mxu0 %v3932_v48 }
 0x1de   :  { %3081 = vmatprep.subr.bf16.mxu1 %v4164_v37 }
 0x1e0   :  { %3106 = vmatpush3.bf16.msra.mxu0 %v4168_v42 }
 0x1e1   :  { %3083 = vmatpush1.bf16.msra.mxu1 %v4171_v43  ;;  %3107 = vmatprep.subr.bf16.mxu0 %v3932_v48 }
 0x1e2   :  { %3085 = vmatprep.subr.bf16.mxu1 %v4175_v49 }
 0x1e4   :  { %3109 = vmatpush3.bf16.msra.mxu0 %v4178_v54 }
 0x1e5   :  { %3087 = vmatpush1.bf16.msra.mxu1 %v4181_v55  ;;  %3110 = vmatprep.subr.bf16.mxu0 %v3932_v48 }
 0x1e6   :  { %3089 = vmatprep.subr.bf16.mxu1 %v4185_v60 }
 0x1e8   :  { %3112 = vmatpush3.bf16.msra.mxu0 %v4188_v63 }
 0x1e9   :  { %3091 = vmatpush1.bf16.msra.mxu1 %v4191_v0  ;;  %3113 = vmatprep.subr.bf16.mxu0 %v3932_v48 }
 0x1ea   :  { %3117 = vmatprep.subr.bf16.mxu1 %v4114_v46 }
 0x1ec   :  { %619 = vmatmul.mubr.f32.vlgmr.msra.gmra.mrb[0].mxu1 %v4202_v6  ;;  %3115 = vmatpush3.bf16.msra.mxu0 %v4196_v5 }
 0x1ed   :  { %3148 = vmatprep.subr.bf16.mxu0 %v3932_v48  ;;  %3119 = vmatpush1.bf16.msra.mxu1 %v4119_v57 }
 0x1ee   :  { %3121 = vmatprep.subr.bf16.mxu1 %v4121_v59  ;;  %786 = vmatprep.mubr.f32.mxu1 %v3931_v47 }
 0x1ef   :  { %2644 = vmatmul.mubr.f32.vlgmr.msra.gmra.mrb[8].mxu0 %v4202_v6 }
 0x1f0   :  { %3150 = vmatpush3.bf16.msra.mxu0 %v4123_v1  ;;  %2678 = vmatprep.mubr.msk.f32.mxu0 %vm3933_vm4, %v3931_v47 }
 0x1f1   :  { %3151 = vmatprep.subr.bf16.mxu0 %v3932_v48  ;;  %3123 = vmatpush1.bf16.msra.mxu1 %v4126_v3 }
 0x1f2   :  { %3125 = vmatprep.subr.bf16.mxu1 %v4130_v7 }
 0x1f4   :  { %3153 = vmatpush3.bf16.msra.mxu0 %v4133_v15 }
 0x1f5   :  { %3154 = vmatprep.subr.bf16.mxu0 %v3932_v48  ;;  %3127 = vmatpush1.bf16.msra.mxu1 %v4136_v16 }
 0x1f6   :  { %3129 = vmatprep.subr.bf16.mxu1 %v4140_v19 }
 0x1f8   :  { %3156 = vmatpush3.bf16.msra.mxu0 %v4146_v24 }
 0x1f9   :  { %3157 = vmatprep.subr.bf16.mxu0 %v3932_v48  ;;  %3131 = vmatpush1.bf16.msra.mxu1 %v4149_v25 }
 0x1fa   :  { %3133 = vmatprep.subr.bf16.mxu1 %v4153_v28 }
 0x1fc   :  { %3159 = vmatpush3.bf16.msra.mxu0 %v4157_v33 }
 0x1fd   :  { %3160 = vmatprep.subr.bf16.mxu0 %v3932_v48  ;;  %3135 = vmatpush1.bf16.msra.mxu1 %v4160_v34 }
 0x1fe   :  { %3137 = vmatprep.subr.bf16.mxu1 %v4164_v37 }
 0x200   :  { %3162 = vmatpush3.bf16.msra.mxu0 %v4168_v42 }
 0x201   :  { %3163 = vmatprep.subr.bf16.mxu0 %v3932_v48  ;;  %3139 = vmatpush1.bf16.msra.mxu1 %v4171_v43 }
 0x202   :  { %3141 = vmatprep.subr.bf16.mxu1 %v4175_v49 }
 0x204   :  { %3165 = vmatpush3.bf16.msra.mxu0 %v4178_v54 }
 0x205   :  { %3166 = vmatprep.subr.bf16.mxu0 %v3932_v48  ;;  %3143 = vmatpush1.bf16.msra.mxu1 %v4181_v55 }
 0x206   :  { %3145 = vmatprep.subr.bf16.mxu1 %v4185_v60 }
 0x208   :  { %3168 = vmatpush3.bf16.msra.mxu0 %v4188_v63 }
 0x209   :  { %3169 = vmatprep.subr.bf16.mxu0 %v3932_v48  ;;  %3147 = vmatpush1.bf16.msra.mxu1 %v4191_v0 }
 0x20a   :  { %3173 = vmatprep.subr.bf16.mxu1 %v4114_v46 }
 0x20c   :  { %3171 = vmatpush3.bf16.msra.mxu0 %v4196_v5 }
 0x20d   :  { %3204 = vmatprep.subr.bf16.mxu0 %v3932_v48 }
 0x2a0   :  { %v2607_v12 = vpop.f32.mrb[4].mxu0 }
 0x2a1   :  { %v4254_v14 = vadd.f32 %v2607_v12, %v375_v11  ;;  %v534_v17 = vpop.f32.mrb[5].mxu0 }
 0x2a2   :  { %v535_v52 = vadd.f32 %v534_v17, %v375_v11 }
 0x2a5   :  { %v2610_v18 = vpop.f32.mrb[6].mxu0 }
 0x2a6   :  { %v4256_v20 = vadd.f32 %v2610_v18, %v375_v11  ;;  %v544_v21 = vpop.f32.mrb[7].mxu0 }
 0x2a7   :  { %v4258_v22 = vadd.f32 %v544_v21, %v375_v11 }
 0x2bf   :  { %v620_v26 = vpop.f32.mrb[0].mxu1 }
 0x2c0   :  { %v3596_v27 = vadd.f32 %v620_v26, %v4263_v23  ;;  %v622_v30 = vpop.f32.mrb[1].mxu1 }
 0x2c1   :  { %v3597_v38 = vadd.f32 %v622_v30, %v4269_v36 }
 0x2c2   :  { %v2302_v31 = vmul.f32 -1.442695, %v3596_v27  ;;  %v691_v32 = vpop.f32.mrb[8].mxu0 }
 0x2c3   :  { %v2645_v35 = vpop.f32.mrb[9].mxu0  ;;  %v2303_v39 = vmul.f32 -1.442695, %v3597_v38  ;;  %v715_v45 = vadd.f32 %v4275_v44, %v691_v32 }
 0x2c4   :  { %3647 = vpow2.f32 %v2302_v31 }
 0x2c5   :  { %3649 = vpow2.f32 %v2303_v39 }
 0x2ce   :  { %v3648_v40 = vpop.eup %3647 }
 0x2cf   :  { %v699_v41 = vadd.f32 1.0, %v3648_v40  ;;  %v3650_v50 = vpop.eup %3649 }
 0x2d0   :  { %v706_v56 = vadd.f32 1.0, %v3650_v50 }
 0x2d1   :  { %3651 = vrcp.f32 %v699_v41 }
 0x2db   :  { %v3652_v51 = vpop.eup %3651 }
 0x2dc   :  { %v716_v53 = vmul.f32 %v3652_v51, %v715_v45 }
 0x2de   :  { %v717_v58 = vadd.f32 %v716_v53, %v535_v52  ;;  %v1209_v53 = vld [vmem:[#allocation8] sm:$0xff] }
 0x2e0   :  { %3653 = vtanh.f32 %v717_v58 }
 0x2e1   :  { %3655 = vrcp.f32 %v706_v56  ;;  %v1212_v56 = vld [vmem:[#allocation8 + $0x18] sm:$0xff] }
 0x2ea   :  { %v3654_v61 = vpop.eup %3653 }
 0x2eb   :  { %v719_v62 = vsub.f32 %v4202_v6, %v3654_v61  ;;  %v3656_v2 = vpop.eup %3655 }
 0x2ed   :  { %v720_v4 = vmul.f32 %v3656_v2, %v719_v62  ;;  %v1219_v62 = vld [vmem:[#allocation8 + $0x50] sm:$0xff] }
 0x2ef   :  { %v4279_v10 = vadd.f32 %v3654_v61, %v720_v4  ;;  %v1216_v61 = vld [vmem:[#allocation8 + $0x38] sm:$0xff]  ;;  %v1217_v4 = vld [vmem:[#allocation8 + $0x40] sm:$0xff] }
 0x2f1   :  { %787 = vmatmul.mubr.f32.vlgmr.msra.gmra.mrb[2].mxu1 %v4279_v10  ;;  %2679 = vmatmul.mubr.f32.vlgmr.msra.gmra.mrb[10].mxu0 %v4279_v10 }
 0x2f2   :  { %3175 = vmatpush1.bf16.msra.mxu1 %v4119_v57  ;;  %3206 = vmatpush3.bf16.msra.mxu0 %v4123_v1 }
 0x2f3   :  { %3177 = vmatprep.subr.bf16.mxu1 %v4121_v59  ;;  %3207 = vmatprep.subr.bf16.mxu0 %v3932_v48 }
 0x2f4   :  { %948 = vmatprep.mubr.f32.mxu1 %v3931_v47  ;;  %2713 = vmatprep.mubr.msk.f32.mxu0 %vm3933_vm4, %v3931_v47 }
 0x2f6   :  { %3179 = vmatpush1.bf16.msra.mxu1 %v4126_v3  ;;  %3209 = vmatpush3.bf16.msra.mxu0 %v4133_v15 }
 0x2f7   :  { %3181 = vmatprep.subr.bf16.mxu1 %v4130_v7  ;;  %3210 = vmatprep.subr.bf16.mxu0 %v3932_v48 }
 0x2fa   :  { %3183 = vmatpush1.bf16.msra.mxu1 %v4136_v16  ;;  %3212 = vmatpush3.bf16.msra.mxu0 %v4146_v24 }
 0x2fb   :  { %3185 = vmatprep.subr.bf16.mxu1 %v4140_v19  ;;  %3213 = vmatprep.subr.bf16.mxu0 %v3932_v48 }
 0x2fe   :  { %3187 = vmatpush1.bf16.msra.mxu1 %v4149_v25  ;;  %3215 = vmatpush3.bf16.msra.mxu0 %v4157_v33 }
 0x2ff   :  { %3189 = vmatprep.subr.bf16.mxu1 %v4153_v28  ;;  %3216 = vmatprep.subr.bf16.mxu0 %v3932_v48 }
 0x302   :  { %3191 = vmatpush1.bf16.msra.mxu1 %v4160_v34  ;;  %3218 = vmatpush3.bf16.msra.mxu0 %v4168_v42 }
 0x303   :  { %3193 = vmatprep.subr.bf16.mxu1 %v4164_v37  ;;  %3219 = vmatprep.subr.bf16.mxu0 %v3932_v48 }
 0x306   :  { %3195 = vmatpush1.bf16.msra.mxu1 %v4171_v43  ;;  %3221 = vmatpush3.bf16.msra.mxu0 %v4178_v54 }
 0x307   :  { %3197 = vmatprep.subr.bf16.mxu1 %v4175_v49  ;;  %3222 = vmatprep.subr.bf16.mxu0 %v3932_v48 }
 0x30a   :  { %3199 = vmatpush1.bf16.msra.mxu1 %v4181_v55  ;;  %3224 = vmatpush3.bf16.msra.mxu0 %v4188_v63 }
 0x30b   :  { %3201 = vmatprep.subr.bf16.mxu1 %v4185_v60  ;;  %3225 = vmatprep.subr.bf16.mxu0 %v3932_v48 }
 0x30e   :  { %3203 = vmatpush1.bf16.msra.mxu1 %v4191_v0  ;;  %3227 = vmatpush3.bf16.msra.mxu0 %v4196_v5 }
 0x30f   :  { %3229 = vmatprep.subr.bf16.mxu1 %v4114_v46  ;;  %3260 = vmatprep.subr.bf16.mxu0 %v3932_v48 }
 0x3c4   :  { %v788_v6 = vpop.f32.mrb[2].mxu1  ;;  %v859_v11 = vpop.f32.mrb[10].mxu0 }
 0x3c5   :  { %v3598_v12 = vadd.f32 %v788_v6, %v4263_v23  ;;  %v790_v17 = vpop.f32.mrb[3].mxu1  ;;  %v2680_v18 = vpop.f32.mrb[11].mxu0  ;;  %v877_v46 = vadd.f32 %v4275_v44, %v859_v11  ;;  %v1220_v6 = vld [vmem:[#allocation8 + $0x58] sm:$0xff]  ;;  %v3286_v11 = vpack.c.bf16 %v1212_v56, %v1209_v53  ;;  %v1247_v53 = vld [vmem:[#allocation8 + $0x130] sm:$0xff]  ;;  %v1250_v56 = vld [vmem:[#allocation8 + $0x148] sm:$0xff] }
 0x3c6   :  { %v3599_v26 = vadd.f32 %v790_v17, %v4269_v36  ;;  %v3288_v17 = vpack.c.bf16 %v1219_v62, %v1216_v61  ;;  %v1215_v18 = vld [vmem:[#allocation8 + $0x30] sm:$0xff]  ;;  %v3340_v62 = vpack.c.bf16 %v1250_v56, %v1247_v53  ;;  %v1297_v53 = vld [vmem:[#allocation10 + $0x140] sm:$0xff] }
 0x3c7   :  { %v2305_v21 = vmul.f32 -1.442695, %v3598_v12  ;;  %v1259_v56 = vld [vmem:[#allocation10 + $0x10] sm:$0xff] }
 0x3c8   :  { %v2306_v27 = vmul.f32 -1.442695, %v3599_v26  ;;  %v3320_v26 = vpack.c.bf16 %v1220_v6, %v1217_v4  ;;  %v1248_v4 = vld [vmem:[#allocation8 + $0x138] sm:$0xff] }
 0x3c9   :  { %3657 = vpow2.f32 %v2305_v21  ;;  %v1222_v21 = vld [vmem:[#allocation8 + $0x68] sm:$0xff]  ;;  %v1252_v6 = vld [vmem:[#allocation8 + $0x158] sm:$0xff] }
 0x3ca   :  { %3659 = vpow2.f32 %v2306_v27  ;;  %v1225_v27 = vld [vmem:[#allocation8 + $0x80] sm:$0xff] }
 0x3d3   :  { %v3658_v30 = vpop.eup %3657 }
 0x3d4   :  { %v867_v31 = vadd.f32 1.0, %v3658_v30  ;;  %v3660_v32 = vpop.eup %3659  ;;  %v1223_v30 = vld [vmem:[#allocation8 + $0x70] sm:$0xff] }
 0x3d5   :  { %v874_v40 = vadd.f32 1.0, %v3660_v32 }
 0x3d6   :  { %3661 = vrcp.f32 %v867_v31  ;;  %v1226_v31 = vld [vmem:[#allocation8 + $0x88] sm:$0xff] }
 0x3e0   :  { %v3662_v35 = vpop.eup %3661 }
 0x3e1   :  { %v878_v38 = vmul.f32 %v3662_v35, %v877_v46  ;;  %v3292_v46 = vpack.c.bf16 %v1225_v27, %v1222_v21  ;;  %v3324_v35 = vpack.c.bf16 %v1226_v31, %v1223_v30  ;;  %v1251_v27 = vld [vmem:[#allocation8 + $0x150] sm:$0xff]  ;;  %v1254_v30 = vld [vmem:[#allocation8 + $0x168] sm:$0xff] }
 0x3e2   :  { %v3314_v31 = vpack.c.bf16 %v1254_v30, %v1251_v27  ;;  %v1265_v30 = vld [vmem:[#allocation10 + $0x40] sm:$0xff] }
 0x3e3   :  { %v879_v39 = vadd.f32 %v878_v38, %v4254_v14  ;;  %v1221_v38 = vld [vmem:[#allocation8 + $0x60] sm:$0xff] }
 0x3e5   :  { %3663 = vtanh.f32 %v879_v39  ;;  %v1224_v39 = vld [vmem:[#allocation8 + $0x78] sm:$0xff] }
 0x3e6   :  { %3665 = vrcp.f32 %v874_v40  ;;  %v1228_v40 = vld [vmem:[#allocation8 + $0x98] sm:$0xff] }
 0x3ef   :  { %v3664_v41 = vpop.eup %3663 }
 0x3f0   :  { %v881_v45 = vsub.f32 %v4279_v10, %v3664_v41  ;;  %v3666_v50 = vpop.eup %3665 }
 0x3f2   :  { %v882_v51 = vmul.f32 %v3666_v50, %v881_v45  ;;  %v1229_v45 = vld [vmem:[#allocation8 + $0xa0] sm:$0xff]  ;;  %v1232_v50 = vld [vmem:[#allocation8 + $0xb8] sm:$0xff] }
 0x3f4   :  { %v4323_v52 = vadd.f32 %v3664_v41, %v882_v51  ;;  %v1231_v41 = vld [vmem:[#allocation8 + $0xb0] sm:$0xff]  ;;  %v3294_v51 = vpack.c.bf16 %v1224_v39, %v1221_v38  ;;  %v1257_v38 = vld [vmem:[#allocation10] sm:$0xff] }
 0x3f6   :  { %949 = vmatmul.mubr.f32.vlgmr.msra.gmra.mrb[4].mxu1 %v4323_v52  ;;  %2714 = vmatmul.mubr.f32.vlgmr.msra.gmra.mrb[12].mxu0 %v4323_v52 }
 0x3f7   :  { %3231 = vmatpush1.bf16.msra.mxu1 %v4119_v57  ;;  %3262 = vmatpush3.bf16.msra.mxu0 %v4123_v1  ;;  %v1210_v57 = vld [vmem:[#allocation8 + $0x8] sm:$0xff]  ;;  %v1211_v1 = vld [vmem:[#allocation8 + $0x10] sm:$0xff] }
 0x3f8   :  { %3233 = vmatprep.subr.bf16.mxu1 %v4121_v59  ;;  %3263 = vmatprep.subr.bf16.mxu0 %v3932_v48  ;;  %v1213_v59 = vld [vmem:[#allocation8 + $0x20] sm:$0xff] }
 0x3f9   :  { %1110 = vmatprep.mubr.f32.mxu1 %v3931_v47  ;;  %2748 = vmatprep.mubr.msk.f32.mxu0 %vm3933_vm4, %v3931_v47 }
 0x3fb   :  { %3235 = vmatpush1.bf16.msra.mxu1 %v4126_v3  ;;  %3265 = vmatpush3.bf16.msra.mxu0 %v4133_v15  ;;  %v3284_v3 = vpack.c.bf16 %v1213_v59, %v1210_v57  ;;  %v3296_v57 = vpack.c.bf16 %v1231_v41, %v1228_v40  ;;  %v3328_v59 = vpack.c.bf16 %v1232_v50, %v1229_v45  ;;  %v1264_v40 = vld [vmem:[#allocation10 + $0x38] sm:$0xff]  ;;  %v1263_v45 = vld [vmem:[#allocation10 + $0x30] sm:$0xff]  ;;  %v1266_v50 = vld [vmem:[#allocation10 + $0x48] sm:$0xff] }
 0x3fc   :  { %3237 = vmatprep.subr.bf16.mxu1 %v4130_v7  ;;  %3266 = vmatprep.subr.bf16.mxu0 %v3932_v48  ;;  %v1214_v7 = vld [vmem:[#allocation8 + $0x28] sm:$0xff] }
 0x3fd   :  { %v3316_v15 = vpack.c.bf16 %v1214_v7, %v1211_v1  ;;  %v1227_v1 = vld [vmem:[#allocation8 + $0x90] sm:$0xff]  ;;  %v1234_v7 = vld [vmem:[#allocation8 + $0xc8] sm:$0xff] }
 0x3ff   :  { %3239 = vmatpush1.bf16.msra.mxu1 %v4136_v16  ;;  %3268 = vmatpush3.bf16.msra.mxu0 %v4146_v24 }
 0x400   :  { %3241 = vmatprep.subr.bf16.mxu1 %v4140_v19  ;;  %3269 = vmatprep.subr.bf16.mxu0 %v3932_v48 }
 0x403   :  { %3243 = vmatpush1.bf16.msra.mxu1 %v4149_v25  ;;  %3271 = vmatpush3.bf16.msra.mxu0 %v4157_v33 }
 0x404   :  { %3245 = vmatprep.subr.bf16.mxu1 %v4153_v28  ;;  %3272 = vmatprep.subr.bf16.mxu0 %v3932_v48 }
 0x407   :  { %3247 = vmatpush1.bf16.msra.mxu1 %v4160_v34  ;;  %3274 = vmatpush3.bf16.msra.mxu0 %v4168_v42 }
 0x408   :  { %3249 = vmatprep.subr.bf16.mxu1 %v4164_v37  ;;  %3275 = vmatprep.subr.bf16.mxu0 %v3932_v48 }
 0x40b   :  { %3251 = vmatpush1.bf16.msra.mxu1 %v4171_v43  ;;  %3277 = vmatpush3.bf16.msra.mxu0 %v4178_v54 }
 0x40c   :  { %3253 = vmatprep.subr.bf16.mxu1 %v4175_v49  ;;  %3278 = vmatprep.subr.bf16.mxu0 %v3932_v48 }
 0x40f   :  { %3255 = vmatpush1.bf16.msra.mxu1 %v4181_v55  ;;  %3280 = vmatpush3.bf16.msra.mxu0 %v4188_v63 }
 0x410   :  { %3257 = vmatprep.subr.bf16.mxu1 %v4185_v60  ;;  %3281 = vmatprep.subr.bf16.mxu0 %v3932_v48 }
 0x413   :  { %3259 = vmatpush1.bf16.msra.mxu1 %v4191_v0  ;;  %3283 = vmatpush3.bf16.msra.mxu0 %v4196_v5 }
 0x414   :  { %3285 = vmatprep.subr.bf16.mxu1 %v3284_v3  ;;  %3317 = vmatprep.subr.bf16.mxu0 %v3316_v15  ;;  %v1230_v3 = vld [vmem:[#allocation8 + $0xa8] sm:$0xff] }
 0x4c9   :  { %v950_v16 = vpop.f32.mrb[4].mxu1  ;;  %v1021_v19 = vpop.f32.mrb[12].mxu0 }
 0x4ca   :  { %v3600_v24 = vadd.f32 %v950_v16, %v4263_v23  ;;  %v952_v25 = vpop.f32.mrb[5].mxu1  ;;  %v2715_v28 = vpop.f32.mrb[13].mxu0  ;;  %v1039_v54 = vadd.f32 %v4275_v44, %v1021_v19  ;;  %v1235_v16 = vld [vmem:[#allocation8 + $0xd0] sm:$0xff]  ;;  %v1238_v19 = vld [vmem:[#allocation8 + $0xe8] sm:$0xff] }
 0x4cb   :  { %v3601_v34 = vadd.f32 %v952_v25, %v4269_v36  ;;  %v3332_v28 = vpack.c.bf16 %v1238_v19, %v1235_v16  ;;  %v1276_v16 = vld [vmem:[#allocation10 + $0x98] sm:$0xff]  ;;  %v1279_v19 = vld [vmem:[#allocation10 + $0xb0] sm:$0xff] }
 0x4cc   :  { %v2307_v33 = vmul.f32 -1.442695, %v3600_v24  ;;  %v3298_v24 = vpack.c.bf16 %v1230_v3, %v1227_v1  ;;  %v1269_v3 = vld [vmem:[#allocation10 + $0x60] sm:$0xff] }
 0x4cd   :  { %v2308_v37 = vmul.f32 -1.442695, %v3601_v34  ;;  %v1236_v34 = vld [vmem:[#allocation8 + $0xd8] sm:$0xff] }
 0x4ce   :  { %3667 = vpow2.f32 %v2307_v33  ;;  %v1233_v33 = vld [vmem:[#allocation8 + $0xc0] sm:$0xff] }
 0x4cf   :  { %3669 = vpow2.f32 %v2308_v37  ;;  %v1240_v37 = vld [vmem:[#allocation8 + $0xf8] sm:$0xff] }
 0x4d8   :  { %v3668_v42 = vpop.eup %3667 }
 0x4d9   :  { %v1029_v43 = vadd.f32 1.0, %v3668_v42  ;;  %v3670_v49 = vpop.eup %3669  ;;  %v1243_v42 = vld [vmem:[#allocation8 + $0x110] sm:$0xff] }
 0x4da   :  { %v1036_v0 = vadd.f32 1.0, %v3670_v49  ;;  %v1244_v49 = vld [vmem:[#allocation8 + $0x118] sm:$0xff] }
 0x4db   :  { %3671 = vrcp.f32 %v1029_v43  ;;  %v1241_v43 = vld [vmem:[#allocation8 + $0x100] sm:$0xff] }
 0x4e5   :  { %v3672_v55 = vpop.eup %3671 }
 0x4e6   :  { %v1040_v60 = vmul.f32 %v3672_v55, %v1039_v54  ;;  %v3302_v54 = vpack.c.bf16 %v1236_v34, %v1233_v33  ;;  %v3304_v55 = vpack.c.bf16 %v1243_v42, %v1240_v37  ;;  %v1282_v34 = vld [vmem:[#allocation10 + $0xc8] sm:$0xff]  ;;  %v1285_v37 = vld [vmem:[#allocation10 + $0xe0] sm:$0xff] }
 0x4e7   :  { %v1281_v42 = vld [vmem:[#allocation10 + $0xc0] sm:$0xff] }
 0x4e8   :  { %v1041_v63 = vadd.f32 %v1040_v60, %v4258_v22  ;;  %v1218_v22 = vld [vmem:[#allocation8 + $0x48] sm:$0xff]  ;;  %v3336_v60 = vpack.c.bf16 %v1244_v49, %v1241_v43  ;;  %v4403_v43 = vpack.c.bf16 %v1285_v37, %v1282_v34  ;;  %v1284_v49 = vld [vmem:[#allocation10 + $0xd8] sm:$0xff]  ;;  %v1301_v34 = vld [vmem:[#allocation10 + $0x160] sm:$0xff] }
 0x4e9   :  { %v3290_v32 = vpack.c.bf16 %v1218_v22, %v1215_v18  ;;  %v1256_v18 = vld [vmem:[#allocation8 + $0x178] sm:$0xff] }
 0x4ea   :  { %3673 = vtanh.f32 %v1041_v63  ;;  %v1239_v63 = vld [vmem:[#allocation8 + $0xf0] sm:$0xff]  ;;  %v1304_v37 = vld [vmem:[#allocation10 + $0x178] sm:$0xff] }
 0x4eb   :  { %3675 = vrcp.f32 %v1036_v0  ;;  %v1242_v0 = vld [vmem:[#allocation8 + $0x108] sm:$0xff] }
 0x4f4   :  { %v3674_v5 = vpop.eup %3673 }
 0x4f5   :  { %v1043_v14 = vsub.f32 %v4323_v52, %v3674_v5  ;;  %v3676_v58 = vpop.eup %3675 }
 0x4f7   :  { %v1044_v2 = vmul.f32 %v3676_v58, %v1043_v14  ;;  %v1249_v14 = vld [vmem:[#allocation8 + $0x140] sm:$0xff]  ;;  %v3306_v58 = vpack.c.bf16 %v1242_v0, %v1239_v63  ;;  %v1287_v0 = vld [vmem:[#allocation10 + $0xf0] sm:$0xff] }
 0x4f9   :  { %v4365_v12 = vadd.f32 %v3674_v5, %v1044_v2  ;;  %v1246_v5 = vld [vmem:[#allocation8 + $0x128] sm:$0xff]  ;;  %v1245_v2 = vld [vmem:[#allocation8 + $0x120] sm:$0xff] }
 0x4fa   :  { %v3308_v61 = vpack.c.bf16 %v1249_v14, %v1246_v5  ;;  %v3310_v22 = vpack.c.bf16 %v1248_v4, %v1245_v2  ;;  %v1290_v5 = vld [vmem:[#allocation10 + $0x108] sm:$0xff]  ;;  %v1293_v4 = vld [vmem:[#allocation10 + $0x120] sm:$0xff] }
 0x4fb   :  { %1111 = vmatmul.mubr.f32.vlgmr.msra.gmra.mrb[6].mxu1 %v4365_v12  ;;  %2749 = vmatmul.mubr.f32.vlgmr.msra.gmra.mrb[14].mxu0 %v4365_v12  ;;  %v1294_v14 = vld [vmem:[#allocation10 + $0x128] sm:$0xff] }
 0x4fc   :  { %3287 = vmatpush1.bf16.msra.mxu1 %v3286_v11  ;;  %3319 = vmatpush3.bf16.msra.mxu0 %v3316_v15  ;;  %v1237_v15 = vld [vmem:[#allocation8 + $0xe0] sm:$0xff]  ;;  %v1255_v11 = vld [vmem:[#allocation8 + $0x170] sm:$0xff]  ;;  %v4417_v2 = vpack.c.bf16 %v1297_v53, %v1294_v14 }
 0x4fd   :  { %2783 = vmatprep.mubr.f32.mxu0 %v4279_v10  ;;  %3289 = vmatprep.subr.bf16.mxu1 %v3288_v17  ;;  %v3300_v25 = vpack.c.bf16 %v1237_v15, %v1234_v7  ;;  %v1253_v17 = vld [vmem:[#allocation8 + $0x160] sm:$0xff]  ;;  %v3312_v21 = vpack.c.bf16 %v1255_v11, %v1252_v6  ;;  %v1272_v7 = vld [vmem:[#allocation10 + $0x78] sm:$0xff] }
 0x4fe   :  { %3321 = vmatprep.subr.bf16.mxu0 %v3320_v26  ;;  %1387 = vmatprep.mubr.f32.mxu1 %v3931_v47  ;;  %v4394_v15 = vpack.c.bf16 %v1272_v7, %v1269_v3  ;;  %v1296_v6 = vld [vmem:[#allocation10 + $0x138] sm:$0xff]  ;;  %v1289_v3 = vld [vmem:[#allocation10 + $0x100] sm:$0xff] }
 0x4ff   :  { %v4422_v11 = vpack.c.bf16 %v1296_v6, %v1293_v4  ;;  %v1292_v7 = vld [vmem:[#allocation10 + $0x118] sm:$0xff] }
 0x500   :  { %3291 = vmatpush1.bf16.msra.mxu1 %v3290_v32  ;;  %3323 = vmatpush3.bf16.msra.mxu0 %v3320_v26  ;;  %v3344_v26 = vpack.c.bf16 %v1256_v18, %v1253_v17  ;;  %v1258_v32 = vld [vmem:[#allocation10 + $0x8] sm:$0xff]  ;;  %v1300_v17 = vld [vmem:[#allocation10 + $0x158] sm:$0xff]  ;;  %v1303_v18 = vld [vmem:[#allocation10 + $0x170] sm:$0xff] }
 0x501   :  { %3293 = vmatprep.subr.bf16.mxu1 %v3292_v46  ;;  %3325 = vmatprep.subr.bf16.mxu0 %v3324_v35  ;;  %v1261_v46 = vld [vmem:[#allocation10 + $0x20] sm:$0xff] }
 0x504   :  { %3295 = vmatpush1.bf16.msra.mxu1 %v3294_v51  ;;  %3327 = vmatpush3.bf16.msra.mxu0 %v3324_v35  ;;  %v4380_v35 = vpack.c.bf16 %v1261_v46, %v1258_v32  ;;  %v4388_v51 = vpack.c.bf16 %v1266_v50, %v1263_v45  ;;  %v1271_v46 = vld [vmem:[#allocation10 + $0x70] sm:$0xff] }
 0x505   :  { %3297 = vmatprep.subr.bf16.mxu1 %v3296_v57  ;;  %3329 = vmatprep.subr.bf16.mxu0 %v3328_v59  ;;  %v1270_v57 = vld [vmem:[#allocation10 + $0x68] sm:$0xff]  ;;  %v1283_v50 = vld [vmem:[#allocation10 + $0xd0] sm:$0xff] }
 0x508   :  { %3299 = vmatpush1.bf16.msra.mxu1 %v3298_v24  ;;  %3331 = vmatpush3.bf16.msra.mxu0 %v3328_v59  ;;  %v1273_v59 = vld [vmem:[#allocation10 + $0x80] sm:$0xff]  ;;  %v4398_v24 = vpack.c.bf16 %v1279_v19, %v1276_v16  ;;  %v4448_v16 = vpack.c.bf16 %v1292_v7, %v1289_v3  ;;  %v1295_v19 = vld [vmem:[#allocation10 + $0x130] sm:$0xff] }
 0x509   :  { %3301 = vmatprep.subr.bf16.mxu1 %v3300_v25  ;;  %3333 = vmatprep.subr.bf16.mxu0 %v3332_v28  ;;  %v4392_v1 = vpack.c.bf16 %v1273_v59, %v1270_v57  ;;  %v1275_v25 = vld [vmem:[#allocation10 + $0x90] sm:$0xff]  ;;  %v1286_v57 = vld [vmem:[#allocation10 + $0xe8] sm:$0xff] }
 0x50a   :  { %v4444_v59 = vpack.c.bf16 %v1286_v57, %v1283_v50 }
 0x50c   :  { %3303 = vmatpush1.bf16.msra.mxu1 %v3302_v54  ;;  %3335 = vmatpush3.bf16.msra.mxu0 %v3332_v28  ;;  %v1278_v28 = vld [vmem:[#allocation10 + $0xa8] sm:$0xff]  ;;  %v1288_v54 = vld [vmem:[#allocation10 + $0xf8] sm:$0xff] }
 0x50d   :  { %3305 = vmatprep.subr.bf16.mxu1 %v3304_v55  ;;  %3337 = vmatprep.subr.bf16.mxu0 %v3336_v60  ;;  %v4400_v33 = vpack.c.bf16 %v1278_v28, %v1275_v25  ;;  %v1291_v55 = vld [vmem:[#allocation10 + $0x110] sm:$0xff]  ;;  %v1298_v25 = vld [vmem:[#allocation10 + $0x148] sm:$0xff] }
 0x50e   :  { %v4409_v63 = vpack.c.bf16 %v1291_v55, %v1288_v54  ;;  %v4452_v28 = vpack.c.bf16 %v1298_v25, %v1295_v19 }
 0x510   :  { %3307 = vmatpush1.bf16.msra.mxu1 %v3306_v58  ;;  %3339 = vmatpush3.bf16.msra.mxu0 %v3336_v60  ;;  %v4406_v60 = vpack.c.bf16 %v1284_v49, %v1281_v42  ;;  %v1262_v58 = vld [vmem:[#allocation10 + $0x28] sm:$0xff]  ;;  %v4456_v42 = vpack.c.bf16 %v1304_v37, %v1301_v34 }
 0x511   :  { %3309 = vmatprep.subr.bf16.mxu1 %v3308_v61  ;;  %3341 = vmatprep.subr.bf16.mxu0 %v3340_v62  ;;  %v4411_v61 = vpack.c.bf16 %v1262_v58, %v1259_v56 }
 0x514   :  { %3311 = vmatpush1.bf16.msra.mxu1 %v3310_v22  ;;  %3343 = vmatpush3.bf16.msra.mxu0 %v3340_v62  ;;  %v4414_v62 = vpack.c.bf16 %v1290_v5, %v1287_v0  ;;  %v4426_v22 = vpack.c.bf16 %v1303_v18, %v1300_v17 }
 0x515   :  { %3313 = vmatprep.subr.bf16.mxu1 %v3312_v21  ;;  %3345 = vmatprep.subr.bf16.mxu0 %v3344_v26  ;;  %v1299_v21 = vld [vmem:[#allocation10 + $0x150] sm:$0xff] }
 0x518   :  { %3315 = vmatpush1.bf16.msra.mxu1 %v3314_v31  ;;  %3347 = vmatpush3.bf16.msra.mxu0 %v3344_v26  ;;  %v1302_v26 = vld [vmem:[#allocation10 + $0x168] sm:$0xff]  ;;  %v1268_v31 = vld [vmem:[#allocation10 + $0x58] sm:$0xff] }
 0x519   :  { %3380 = vmatprep.subr.bf16.mxu0 %v3932_v48  ;;  %3349 = vmatprep.subr.bf16.mxu1 %v4380_v35  ;;  %v4428_v27 = vpack.c.bf16 %v1302_v26, %v1299_v21  ;;  %v4431_v32 = vpack.c.bf16 %v1268_v31, %v1265_v30 }
 0x51b   :  { %1388 = vmatmul.mubr.f32.vlgmr.msra.gmra.mrb[8].mxu1 %v4279_v10  ;;  %2784 = vmatmul.mubr.f32.vlgmr.msra.gmra.mrb[16].mxu0 %v4323_v52  ;;  %v1260_v10 = vld [vmem:[#allocation10 + $0x18] sm:$0xff] }
 0x51c   :  { %2786 = vmatprep.mubr.f32.mxu0 %v4365_v12  ;;  %1393 = vmatprep.mubr.f32.mxu1 %v3931_v47  ;;  %v4382_v39 = vpack.c.bf16 %v1260_v10, %v1257_v38  ;;  %v1274_v38 = vld [vmem:[#allocation10 + $0x88] sm:$0xff]  ;;  %v1277_v10 = vld [vmem:[#allocation10 + $0xa0] sm:$0xff] }
 0x51d   :  { %3382 = vmatpush3.bf16.msra.mxu0 %v4411_v61 }
 0x51e   :  { %3351 = vmatpush1.bf16.msra.mxu1 %v4382_v39  ;;  %3383 = vmatprep.subr.bf16.mxu0 %v3932_v48 }
 0x51f   :  { %1394 = vmatmul.mubr.f32.gmra.mrb[10].mxu1 %v4323_v52  ;;  %v1267_v52 = vld [vmem:[#allocation10 + $0x50] sm:$0xff] }
 0x520   :  { %1399 = vmatprep.mubr.f32.mxu1 %v3931_v47  ;;  %v4386_v41 = vpack.c.bf16 %v1267_v52, %v1264_v40  ;;  %v4437_v40 = vpack.c.bf16 %v1274_v38, %v1271_v46  ;;  %v1280_v52 = vld [vmem:[#allocation10 + $0xb8] sm:$0xff] }
 0x521   :  { %3385 = vmatpush3.bf16.msra.mxu0 %v4431_v32  ;;  %v4440_v45 = vpack.c.bf16 %v1280_v52, %v1277_v10 }
 0x522   :  { %3353 = vmatprep.subr.bf16.mxu1 %v4386_v41  ;;  %3386 = vmatprep.subr.bf16.mxu0 %v3932_v48 }
 0x523   :  { %1400 = vmatmul.mubr.f32.gmra.mrb[12].mxu1 %v4365_v12 }
 0x524   :  { %1405 = vmatprep.mubr.f32.mxu1 %v3931_v47  ;;  %3355 = vmatpush1.bf16.msra.mxu1 %v4388_v51 }
 0x525   :  { %3357 = vmatprep.subr.bf16.mxu1 %v4392_v1  ;;  %3388 = vmatpush3.bf16.msra.mxu0 %v4437_v40 }
 0x526   :  { %3389 = vmatprep.subr.bf16.mxu0 %v3932_v48 }
 0x528   :  { %3359 = vmatpush1.bf16.msra.mxu1 %v4394_v15 }
 0x529   :  { %3361 = vmatprep.subr.bf16.mxu1 %v4398_v24  ;;  %3391 = vmatpush3.bf16.msra.mxu0 %v4440_v45 }
 0x52a   :  { %3392 = vmatprep.subr.bf16.mxu0 %v3932_v48 }
 0x52c   :  { %3363 = vmatpush1.bf16.msra.mxu1 %v4400_v33 }
 0x52d   :  { %3365 = vmatprep.subr.bf16.mxu1 %v4403_v43  ;;  %3394 = vmatpush3.bf16.msra.mxu0 %v4444_v59 }
 0x52e   :  { %3395 = vmatprep.subr.bf16.mxu0 %v3932_v48 }
 0x530   :  { %3367 = vmatpush1.bf16.msra.mxu1 %v4406_v60 }
 0x531   :  { %3369 = vmatprep.subr.bf16.mxu1 %v4409_v63  ;;  %3397 = vmatpush3.bf16.msra.mxu0 %v4448_v16 }
 0x532   :  { %3398 = vmatprep.subr.bf16.mxu0 %v3932_v48 }
 0x534   :  { %3371 = vmatpush1.bf16.msra.mxu1 %v4414_v62 }
 0x535   :  { %3373 = vmatprep.subr.bf16.mxu1 %v4417_v2  ;;  %3400 = vmatpush3.bf16.msra.mxu0 %v4452_v28 }
 0x536   :  { %3401 = vmatprep.subr.bf16.mxu0 %v3932_v48 }
 0x538   :  { %3375 = vmatpush1.bf16.msra.mxu1 %v4422_v11 }
 0x539   :  { %3377 = vmatprep.subr.bf16.mxu1 %v4426_v22  ;;  %3403 = vmatpush3.bf16.msra.mxu0 %v4456_v42 }
 0x53a   :  { %3436 = vmatprep.subr.bf16.mxu0 %v3932_v48 }
 0x53c   :  { %3379 = vmatpush1.bf16.msra.mxu1 %v4428_v27 }
 0x53d   :  { %3405 = vmatprep.subr.bf16.mxu1 %v4380_v35 }
 0x5ce   :  { %v1112_v49 = vpop.f32.mrb[6].mxu1  ;;  %v1183_v54 = vpop.f32.mrb[14].mxu0 }
 0x5cf   :  { %v3602_v55 = vadd.f32 %v1112_v49, %v4263_v23  ;;  %v1114_v0 = vpop.f32.mrb[7].mxu1  ;;  %v2750_v5 = vpop.f32.mrb[15].mxu0  ;;  %v1201_v17 = vadd.f32 %v4275_v44, %v1183_v54  ;;  %v1305_v44 = vld [vmem:[%s4693_s9] sm:$0x7] }
 0x5d0   :  { %v3603_v53 = vadd.f32 %v1114_v0, %v4269_v36  ;;  %v4524_v57 = vrot.slane %v1305_v44, %v366_v13  ;;  %v4529_v49 = vrot.slane %v1305_v44, %v370_v29  ;;  %v4535_v13 = vld [vmem:[%s4694_s10] ss:$0 sm:$0xff] }
 0x5d1   :  { %v2309_v14 = vmul.f32 -1.442695, %v3602_v55 }
 0x5d2   :  { %v2310_v56 = vmul.f32 -1.442695, %v3603_v53 }
 0x5d3   :  { %3677 = vpow2.f32 %v2309_v14  ;;  %v4539_v14 = vrot.slane %v1305_v44, %v374_v9 }
 0x5d4   :  { %3679 = vpow2.f32 %v2310_v56 }
 0x5dd   :  { %v3678_v58 = vpop.eup %3677 }
 0x5de   :  { %v1191_v4 = vadd.f32 1.0, %v3678_v58  ;;  %v3680_v6 = vpop.eup %3679 }
 0x5df   :  { %v1198_v30 = vadd.f32 1.0, %v3680_v6 }
 0x5e0   :  { %3681 = vrcp.f32 %v1191_v4 }
 0x5ea   :  { %v3682_v18 = vpop.eup %3681 }
 0x5eb   :  { %v1202_v21 = vmul.f32 %v3682_v18, %v1201_v17 }
 0x5ed   :  { %v1203_v26 = vadd.f32 %v1202_v21, %v4256_v20  ;;  %v4474_v20 = vld [vmem:[%s4685_s1 + $0x8] sm:$0xff] }
 0x5ee   :  { %v4465_v23 = vpop.f32.mrb[16].mxu0 }
 0x5ef   :  { %3683 = vtanh.f32 %v1203_v26  ;;  %v4467_v31 = vpop.f32.mrb[17].mxu0 }
 0x5f0   :  { %3685 = vrcp.f32 %v1198_v30  ;;  %v1479_v58 = vadd.f32 %v4467_v31, %v4539_v14 }
 0x5f9   :  { %v3684_v36 = vpop.eup %3683 }
 0x5fa   :  { %v1205_v46 = vsub.f32 %v4365_v12, %v3684_v36  ;;  %v3686_v38 = vpop.eup %3685 }
 0x5fc   :  { %v1206_v10 = vmul.f32 %v3686_v38, %v1205_v46 }
 0x5fe   :  { %v1207_v52 = vadd.f32 %v3684_v36, %v1206_v10 }
 0x600   :  { %1406 = vmatmul.mubr.f32.gmra.mrb[14].mxu1 %v1207_v52  ;;  %1208 = vst [vmem:[#allocation14] sm:$0xff] %v1207_v52  ;;  %2787 = vmatmul.mubr.f32.gmra.mrb[18].mxu0 %v1207_v52 }
 0x601   :  { %1563 = vmatprep.mubr.f32.mxu1 %v3931_v47  ;;  %2821 = vmatprep.mubr.msk.f32.mxu0 %vm3933_vm4, %v3931_v47 }
 0x604   :  { %1564 = vmatmul.mubr.f32.vlgmr.msra.gmra.mrb[8].mxu1 %v4474_v20  ;;  %2822 = vmatmul.mubr.f32.vlgmr.msra.gmra.mrb[20].mxu0 %v4474_v20 }
 0x605   :  { %3407 = vmatpush1.bf16.msra.mxu1 %v4382_v39  ;;  %3438 = vmatpush3.bf16.msra.mxu0 %v4411_v61 }
 0x606   :  { %3409 = vmatprep.subr.bf16.mxu1 %v4386_v41  ;;  %3439 = vmatprep.subr.bf16.mxu0 %v3932_v48 }
 0x607   :  { %1731 = vmatprep.mubr.f32.mxu1 %v3931_v47  ;;  %2856 = vmatprep.mubr.msk.f32.mxu0 %vm3933_vm4, %v3931_v47 }
 0x609   :  { %3411 = vmatpush1.bf16.msra.mxu1 %v4388_v51  ;;  %3441 = vmatpush3.bf16.msra.mxu0 %v4431_v32 }
 0x60a   :  { %3413 = vmatprep.subr.bf16.mxu1 %v4392_v1  ;;  %3442 = vmatprep.subr.bf16.mxu0 %v3932_v48 }
 0x60d   :  { %3415 = vmatpush1.bf16.msra.mxu1 %v4394_v15  ;;  %3444 = vmatpush3.bf16.msra.mxu0 %v4437_v40 }
 0x60e   :  { %3417 = vmatprep.subr.bf16.mxu1 %v4398_v24  ;;  %3445 = vmatprep.subr.bf16.mxu0 %v3932_v48 }
 0x611   :  { %3419 = vmatpush1.bf16.msra.mxu1 %v4400_v33  ;;  %3447 = vmatpush3.bf16.msra.mxu0 %v4440_v45 }
 0x612   :  { %3421 = vmatprep.subr.bf16.mxu1 %v4403_v43  ;;  %3448 = vmatprep.subr.bf16.mxu0 %v3932_v48 }
 0x615   :  { %3423 = vmatpush1.bf16.msra.mxu1 %v4406_v60  ;;  %3450 = vmatpush3.bf16.msra.mxu0 %v4444_v59 }
 0x616   :  { %3425 = vmatprep.subr.bf16.mxu1 %v4409_v63  ;;  %3451 = vmatprep.subr.bf16.mxu0 %v3932_v48 }
 0x619   :  { %3427 = vmatpush1.bf16.msra.mxu1 %v4414_v62  ;;  %3453 = vmatpush3.bf16.msra.mxu0 %v4448_v16 }
 0x61a   :  { %3429 = vmatprep.subr.bf16.mxu1 %v4417_v2  ;;  %3454 = vmatprep.subr.bf16.mxu0 %v3932_v48 }
 0x61d   :  { %3431 = vmatpush1.bf16.msra.mxu1 %v4422_v11  ;;  %3456 = vmatpush3.bf16.msra.mxu0 %v4452_v28 }
 0x61e   :  { %3433 = vmatprep.subr.bf16.mxu1 %v4426_v22  ;;  %3457 = vmatprep.subr.bf16.mxu0 %v3932_v48 }
 0x621   :  { %3435 = vmatpush1.bf16.msra.mxu1 %v4428_v27  ;;  %3459 = vmatpush3.bf16.msra.mxu0 %v4456_v42 }
 0x622   :  { %3461 = vmatprep.subr.bf16.mxu1 %v4380_v35  ;;  %3492 = vmatprep.subr.bf16.mxu0 %v3932_v48 }
 0x6d3   :  { %v4518_v12 = vpop.f32.mrb[18].mxu0 }
 0x6d4   :  { %v4520_v50 = vpop.f32.mrb[19].mxu0 }
 0x6d7   :  { %v1565_v3 = vpop.f32.mrb[8].mxu1  ;;  %v1636_v7 = vpop.f32.mrb[20].mxu0 }
 0x6d8   :  { %v3604_v19 = vadd.f32 %v1565_v3, %v4524_v57  ;;  %v1567_v25 = vpop.f32.mrb[9].mxu1  ;;  %v2823_v34 = vpop.f32.mrb[21].mxu0  ;;  %v1660_v53 = vadd.f32 %v4535_v13, %v1636_v7 }
 0x6d9   :  { %v3605_v54 = vadd.f32 %v1567_v25, %v4529_v49  ;;  %v1484_v25 = vadd.f32 %v4465_v23, %v4539_v14 }
 0x6da   :  { %v2312_v37 = vmul.f32 -1.442695, %v3604_v19 }
 0x6db   :  { %v2313_v55 = vmul.f32 -1.442695, %v3605_v54 }
 0x6dc   :  { %3687 = vpow2.f32 %v2312_v37 }
 0x6dd   :  { %3689 = vpow2.f32 %v2313_v55 }
 0x6e6   :  { %v3688_v0 = vpop.eup %3687 }
 0x6e7   :  { %v1644_v5 = vadd.f32 1.0, %v3688_v0  ;;  %v3690_v29 = vpop.eup %3689 }
 0x6e8   :  { %v1651_v6 = vadd.f32 1.0, %v3690_v29 }
 0x6e9   :  { %3691 = vrcp.f32 %v1644_v5 }
 0x6f3   :  { %v3692_v56 = vpop.eup %3691 }
 0x6f4   :  { %v1661_v4 = vmul.f32 %v3692_v56, %v1660_v53 }
 0x6f6   :  { %v1662_v17 = vadd.f32 %v1661_v4, %v1479_v58  ;;  %v2157_v58 = vld [vmem:[#allocation11 + $0x10] sm:$0xff]  ;;  %v2158_v4 = vld [vmem:[#allocation11 + $0x18] sm:$0xff] }
 0x6f8   :  { %3693 = vtanh.f32 %v1662_v17  ;;  %v2160_v17 = vld [vmem:[#allocation11 + $0x28] sm:$0xff] }
 0x6f9   :  { %3695 = vrcp.f32 %v1651_v6  ;;  %v2159_v6 = vld [vmem:[#allocation11 + $0x20] sm:$0xff] }
 0x702   :  { %v3694_v18 = vpop.eup %3693 }
 0x703   :  { %v1664_v21 = vsub.f32 %v4474_v20, %v3694_v18  ;;  %v3696_v26 = vpop.eup %3695 }
 0x705   :  { %v1665_v30 = vmul.f32 %v3696_v26, %v1664_v21  ;;  %v2161_v21 = vld [vmem:[#allocation11 + $0x30] sm:$0xff]  ;;  %v2162_v26 = vld [vmem:[#allocation11 + $0x38] sm:$0xff] }
 0x707   :  { %v4545_v8 = vadd.f32 %v3694_v18, %v1665_v30  ;;  %v3579_v18 = vpack.c.bf16 %v2160_v17, %v2159_v6  ;;  %v3582_v30 = vpack.c.bf16 %v2162_v26, %v2161_v21 }
 0x709   :  { %1732 = vmatmul.mubr.f32.vlgmr.msra.gmra.mrb[10].mxu1 %v4545_v8  ;;  %2857 = vmatmul.mubr.f32.vlgmr.msra.gmra.mrb[22].mxu0 %v4545_v8 }
 0x70a   :  { %3463 = vmatpush1.bf16.msra.mxu1 %v4382_v39  ;;  %3494 = vmatpush3.bf16.msra.mxu0 %v4411_v61 }
 0x70b   :  { %3465 = vmatprep.subr.bf16.mxu1 %v4386_v41  ;;  %3495 = vmatprep.subr.bf16.mxu0 %v3932_v48 }
 0x70c   :  { %1893 = vmatprep.mubr.f32.mxu1 %v3931_v47  ;;  %2891 = vmatprep.mubr.msk.f32.mxu0 %vm3933_vm4, %v3931_v47 }
 0x70e   :  { %3467 = vmatpush1.bf16.msra.mxu1 %v4388_v51  ;;  %3497 = vmatpush3.bf16.msra.mxu0 %v4431_v32 }
 0x70f   :  { %3469 = vmatprep.subr.bf16.mxu1 %v4392_v1  ;;  %3498 = vmatprep.subr.bf16.mxu0 %v3932_v48 }
 0x712   :  { %3471 = vmatpush1.bf16.msra.mxu1 %v4394_v15  ;;  %3500 = vmatpush3.bf16.msra.mxu0 %v4437_v40 }
 0x713   :  { %3473 = vmatprep.subr.bf16.mxu1 %v4398_v24  ;;  %3501 = vmatprep.subr.bf16.mxu0 %v3932_v48 }
 0x716   :  { %3475 = vmatpush1.bf16.msra.mxu1 %v4400_v33  ;;  %3503 = vmatpush3.bf16.msra.mxu0 %v4440_v45 }
 0x717   :  { %3477 = vmatprep.subr.bf16.mxu1 %v4403_v43  ;;  %3504 = vmatprep.subr.bf16.mxu0 %v3932_v48 }
 0x71a   :  { %3479 = vmatpush1.bf16.msra.mxu1 %v4406_v60  ;;  %3506 = vmatpush3.bf16.msra.mxu0 %v4444_v59 }
 0x71b   :  { %3481 = vmatprep.subr.bf16.mxu1 %v4409_v63  ;;  %3507 = vmatprep.subr.bf16.mxu0 %v3932_v48 }
 0x71e   :  { %3483 = vmatpush1.bf16.msra.mxu1 %v4414_v62  ;;  %3509 = vmatpush3.bf16.msra.mxu0 %v4448_v16 }
 0x71f   :  { %3485 = vmatprep.subr.bf16.mxu1 %v4417_v2  ;;  %3510 = vmatprep.subr.bf16.mxu0 %v3932_v48 }
 0x722   :  { %3487 = vmatpush1.bf16.msra.mxu1 %v4422_v11  ;;  %3512 = vmatpush3.bf16.msra.mxu0 %v4452_v28 }
 0x723   :  { %3489 = vmatprep.subr.bf16.mxu1 %v4426_v22  ;;  %3513 = vmatprep.subr.bf16.mxu0 %v3932_v48 }
 0x726   :  { %3491 = vmatpush1.bf16.msra.mxu1 %v4428_v27  ;;  %3515 = vmatpush3.bf16.msra.mxu0 %v4456_v42 }
 0x727   :  { %3517 = vmatprep.subr.bf16.mxu1 %v4380_v35  ;;  %3548 = vmatprep.subr.bf16.mxu0 %v3932_v48 }
 0x7dc   :  { %v1733_v9 = vpop.f32.mrb[10].mxu1  ;;  %v1804_v31 = vpop.f32.mrb[22].mxu0 }
 0x7dd   :  { %v3606_v36 = vadd.f32 %v1733_v9, %v4524_v57  ;;  %v1735_v46 = vpop.f32.mrb[11].mxu1  ;;  %v2858_v38 = vpop.f32.mrb[23].mxu0  ;;  %v1822_v35 = vadd.f32 %v4535_v13, %v1804_v31  ;;  %v2163_v9 = vld [vmem:[#allocation11 + $0x40] sm:$0xff]  ;;  %v2164_v31 = vld [vmem:[#allocation11 + $0x48] sm:$0xff] }
 0x7de   :  { %v3607_v52 = vadd.f32 %v1735_v46, %v4529_v49  ;;  %v2166_v46 = vld [vmem:[#allocation11 + $0x58] sm:$0xff] }
 0x7df   :  { %v2315_v10 = vmul.f32 -1.442695, %v3606_v36  ;;  %v3585_v36 = vpack.c.bf16 %v2164_v31, %v2163_v9 }
 0x7e0   :  { %v2316_v20 = vmul.f32 -1.442695, %v3607_v52  ;;  %v2168_v52 = vld [vmem:[#allocation11 + $0x68] sm:$0xff] }
 0x7e1   :  { %3697 = vpow2.f32 %v2315_v10  ;;  %v2167_v10 = vld [vmem:[#allocation11 + $0x60] sm:$0xff] }
 0x7e2   :  { %3699 = vpow2.f32 %v2316_v20  ;;  %v3591_v20 = vpack.c.bf16 %v2168_v52, %v2167_v10 }
 0x7eb   :  { %v3698_v44 = vpop.eup %3697 }
 0x7ec   :  { %v1812_v3 = vadd.f32 1.0, %v3698_v44  ;;  %v3700_v7 = vpop.eup %3699  ;;  %v2169_v44 = vld [vmem:[#allocation11 + $0x70] sm:$0xff] }
 0x7ed   :  { %v1819_v54 = vadd.f32 1.0, %v3700_v7 }
 0x7ee   :  { %3701 = vrcp.f32 %v1812_v3  ;;  %v2170_v3 = vld [vmem:[#allocation11 + $0x78] sm:$0xff] }
 0x7ef   :  { %v3594_v7 = vpack.c.bf16 %v2170_v3, %v2169_v44 }
 0x7f8   :  { %v3702_v19 = vpop.eup %3701 }
 0x7f9   :  { %v1823_v34 = vmul.f32 %v3702_v19, %v1822_v35 }
 0x7fb   :  { %v1824_v37 = vadd.f32 %v1823_v34, %v1484_v25 }
 0x7fd   :  { %3703 = vtanh.f32 %v1824_v37 }
 0x7fe   :  { %3705 = vrcp.f32 %v1819_v54 }
 0x807   :  { %v3704_v55 = vpop.eup %3703 }
 0x808   :  { %v1826_v0 = vsub.f32 %v4545_v8, %v3704_v55  ;;  %v3706_v5 = vpop.eup %3705 }
 0x80a   :  { %v1827_v53 = vmul.f32 %v3706_v5, %v1826_v0 }
 0x80c   :  { %v4590_v29 = vadd.f32 %v3704_v55, %v1827_v53 }
 0x80e   :  { %1894 = vmatmul.mubr.f32.vlgmr.msra.gmra.mrb[12].mxu1 %v4590_v29  ;;  %2892 = vmatmul.mubr.f32.vlgmr.msra.gmra.mrb[24].mxu0 %v4590_v29 }
 0x80f   :  { %3519 = vmatpush1.bf16.msra.mxu1 %v4382_v39  ;;  %3550 = vmatpush3.bf16.msra.mxu0 %v4411_v61 }
 0x810   :  { %3521 = vmatprep.subr.bf16.mxu1 %v4386_v41  ;;  %3551 = vmatprep.subr.bf16.mxu0 %v3932_v48 }
 0x811   :  { %2055 = vmatprep.mubr.f32.mxu1 %v3931_v47  ;;  %2926 = vmatprep.mubr.msk.f32.mxu0 %vm3933_vm4, %v3931_v47 }
 0x813   :  { %3523 = vmatpush1.bf16.msra.mxu1 %v4388_v51  ;;  %3553 = vmatpush3.bf16.msra.mxu0 %v4431_v32 }
 0x814   :  { %3525 = vmatprep.subr.bf16.mxu1 %v4392_v1  ;;  %3554 = vmatprep.subr.bf16.mxu0 %v3932_v48 }
 0x817   :  { %3527 = vmatpush1.bf16.msra.mxu1 %v4394_v15  ;;  %3556 = vmatpush3.bf16.msra.mxu0 %v4437_v40 }
 0x818   :  { %3529 = vmatprep.subr.bf16.mxu1 %v4398_v24  ;;  %3557 = vmatprep.subr.bf16.mxu0 %v3932_v48 }
 0x81b   :  { %3531 = vmatpush1.bf16.msra.mxu1 %v4400_v33  ;;  %3559 = vmatpush3.bf16.msra.mxu0 %v4440_v45 }
 0x81c   :  { %3533 = vmatprep.subr.bf16.mxu1 %v4403_v43  ;;  %3560 = vmatprep.subr.bf16.mxu0 %v3932_v48 }
 0x81f   :  { %3535 = vmatpush1.bf16.msra.mxu1 %v4406_v60  ;;  %3562 = vmatpush3.bf16.msra.mxu0 %v4444_v59  ;;  %v2155_v59 = vld [vmem:[#allocation11] sm:$0xff] }
 0x820   :  { %3537 = vmatprep.subr.bf16.mxu1 %v4409_v63  ;;  %3563 = vmatprep.subr.bf16.mxu0 %v3932_v48 }
 0x823   :  { %3539 = vmatpush1.bf16.msra.mxu1 %v4414_v62  ;;  %3565 = vmatpush3.bf16.msra.mxu0 %v4448_v16  ;;  %v2156_v16 = vld [vmem:[#allocation11 + $0x8] sm:$0xff] }
 0x824   :  { %3541 = vmatprep.subr.bf16.mxu1 %v4417_v2  ;;  %3566 = vmatprep.subr.bf16.mxu0 %v3932_v48  ;;  %v3573_v23 = vpack.c.bf16 %v2156_v16, %v2155_v59 }
 0x827   :  { %3543 = vmatpush1.bf16.msra.mxu1 %v4422_v11  ;;  %3568 = vmatpush3.bf16.msra.mxu0 %v4452_v28  ;;  %v1489_v11 = vadd.f32 %v4520_v50, %v4539_v14  ;;  %v3576_v50 = vpack.c.bf16 %v2158_v4, %v2157_v58 }
 0x828   :  { %3545 = vmatprep.subr.bf16.mxu1 %v4426_v22  ;;  %3569 = vmatprep.subr.bf16.mxu0 %v3932_v48 }
 0x82b   :  { %3547 = vmatpush1.bf16.msra.mxu1 %v4428_v27  ;;  %3571 = vmatpush3.bf16.msra.mxu0 %v4456_v42 }
 0x82c   :  { %3572 = vmatprep.subr.bf16.mxu1 %v3932_v48 }
 0x8e1   :  { %v1895_v39 = vpop.f32.mrb[12].mxu1  ;;  %v1966_v41 = vpop.f32.mrb[24].mxu0 }
 0x8e2   :  { %v3608_v51 = vadd.f32 %v1895_v39, %v4524_v57  ;;  %v1897_v1 = vpop.f32.mrb[13].mxu1  ;;  %v2893_v15 = vpop.f32.mrb[25].mxu0  ;;  %v1984_v62 = vadd.f32 %v4535_v13, %v1966_v41 }
 0x8e3   :  { %v3609_v33 = vadd.f32 %v1897_v1, %v4529_v49 }
 0x8e4   :  { %v2317_v24 = vmul.f32 -1.442695, %v3608_v51 }
 0x8e5   :  { %v2318_v43 = vmul.f32 -1.442695, %v3609_v33 }
 0x8e6   :  { %3707 = vpow2.f32 %v2317_v24 }
 0x8e7   :  { %3709 = vpow2.f32 %v2318_v43 }
 0x8f0   :  { %v3708_v60 = vpop.eup %3707 }
 0x8f1   :  { %v1974_v63 = vadd.f32 1.0, %v3708_v60  ;;  %v3710_v61 = vpop.eup %3709 }
 0x8f2   :  { %v1981_v32 = vadd.f32 1.0, %v3710_v61 }
 0x8f3   :  { %3711 = vrcp.f32 %v1974_v63 }
 0x8fd   :  { %v3712_v2 = vpop.eup %3711 }
 0x8fe   :  { %v1985_v22 = vmul.f32 %v3712_v2, %v1984_v62 }
 0x900   :  { %v1986_v27 = vadd.f32 %v1985_v22, %v1489_v11 }
 0x902   :  { %3713 = vtanh.f32 %v1986_v27 }
 0x903   :  { %3715 = vrcp.f32 %v1981_v32 }
 0x90c   :  { %v3714_v40 = vpop.eup %3713 }
 0x90d   :  { %v1988_v45 = vsub.f32 %v4590_v29, %v3714_v40  ;;  %v3716_v28 = vpop.eup %3715 }
 0x90f   :  { %v1989_v42 = vmul.f32 %v3716_v28, %v1988_v45 }
 0x911   :  { %v4634_v56 = vadd.f32 %v3714_v40, %v1989_v42 }
 0x913   :  { %2056 = vmatmul.mubr.f32.vlgmr.msra.gmra.mrb[14].mxu1 %v4634_v56  ;;  %2927 = vmatmul.mubr.f32.vlgmr.msra.gmra.mrb[26].mxu0 %v4634_v56 }
 0x914   :  { %3574 = vmatpush3.bf16.msra.mxu1 %v3573_v23  ;;  %2961 = vmatprep.mubr.msk.f32.mxu1 %vm3933_vm4, %v3931_v47  ;;  %v2165_v47 = vld [vmem:[#allocation11 + $0x50] sm:$0xff] }
 0x915   :  { %3575 = vmatprep.subr.bf16.mxu1 %v3932_v48  ;;  %v3588_v38 = vpack.c.bf16 %v2166_v46, %v2165_v47 }
 0x918   :  { %3577 = vmatpush3.bf16.msra.mxu1 %v3576_v50 }
 0x919   :  { %3578 = vmatprep.subr.bf16.mxu1 %v3932_v48 }
 0x91c   :  { %3580 = vmatpush3.bf16.msra.mxu1 %v3579_v18 }
 0x91d   :  { %3581 = vmatprep.subr.bf16.mxu1 %v3932_v48 }
 0x920   :  { %3583 = vmatpush3.bf16.msra.mxu1 %v3582_v30 }
 0x921   :  { %3584 = vmatprep.subr.bf16.mxu1 %v3932_v48 }
 0x924   :  { %3586 = vmatpush3.bf16.msra.mxu1 %v3585_v36 }
 0x925   :  { %3587 = vmatprep.subr.bf16.mxu1 %v3932_v48 }
 0x928   :  { %3589 = vmatpush3.bf16.msra.mxu1 %v3588_v38 }
 0x929   :  { %3590 = vmatprep.subr.bf16.mxu1 %v3932_v48 }
 0x92c   :  { %3592 = vmatpush3.bf16.msra.mxu1 %v3591_v20 }
 0x92d   :  { %3593 = vmatprep.subr.bf16.mxu1 %v3932_v48 }
 0x930   :  { %3595 = vmatpush3.bf16.msra.mxu1 %v3594_v7 }
 0x933   :  { %2962 = vmatmul.mubr.f32.vlgmr.msra.gmra.mrb[16].mxu1 %v4545_v8  ;;  %v1494_v8 = vadd.f32 %v4518_v12, %v4539_v14 }
 0x9e6   :  { %v2057_v35 = vpop.f32.mrb[14].mxu1  ;;  %v2128_v19 = vpop.f32.mrb[26].mxu0 }
 0x9e7   :  { %v3610_v25 = vadd.f32 %v2057_v35, %v4524_v57  ;;  %v2059_v34 = vpop.f32.mrb[15].mxu1  ;;  %v2928_v37 = vpop.f32.mrb[27].mxu0  ;;  %v2146_v48 = vadd.f32 %v4535_v13, %v2128_v19  ;;  %v2321_v57 = vld [vmem:[%s4696_s12] ss:$0 sm:$0xff]  ;;  %s3934_s12 = smov [#allocation14]  }
 0x9e8   :  { %v3611_v55 = vadd.f32 %v2059_v34, %v4529_v49  ;;  %s2275_s27 = sshll.u32 %s3934_s12, 4  ;;  %s2276_s27 = int_to_ptr.vmem [resolvable:$true] %s2275_s27 }
 0x9e9   :  { %v2319_v54 = vmul.f32 -1.442695, %v3610_v25  ;;  %s3863_s29 = scalar_lea.vmem %s2276_s27, 256  ;;  %p3868_p7 = scmp.lt.s32.totalorder %s2276_s27, %s2276_s27 }
 0x9ea   :  { %v2320_v0 = vmul.f32 -1.442695, %v3611_v55  ;;  %p3864_p6 = scmp.ne.s32.totalorder %s2276_s27, %s3863_s29  ;;  %p3869_p8 = scmp.lt.s32.totalorder %s3863_s29, %s3863_s29 }
 0x9eb   :  { %3717 = vpow2.f32 %v2319_v54 }
 0x9ec   :  { %3719 = vpow2.f32 %v2320_v0  ;;  %p3870_p9 = por %p3869_p8, %p3868_p7 }
 0x9ee   :  { %p3871_p10 = pnand %p3870_p9, %p3864_p6 }
 0x9f5   :  { %v3718_v5 = vpop.eup %3717 }
 0x9f6   :  { %v2136_v53 = vadd.f32 1.0, %v3718_v5  ;;  %v3720_v29 = vpop.eup %3719 }
 0x9f7   :  { %v2143_v1 = vadd.f32 1.0, %v3720_v29 }
 0x9f8   :  { %3721 = vrcp.f32 %v2136_v53 }
 0xa02   :  { %v3722_v39 = vpop.eup %3721 }
 0xa03   :  { %v2147_v41 = vmul.f32 %v3722_v39, %v2146_v48 }
 0xa05   :  { %v2148_v51 = vadd.f32 %v2147_v41, %v1494_v8 }
 0xa06   :  { %v2244_v49 = vpop.f32.mrb[16].mxu1 }
 0xa07   :  { %3723 = vtanh.f32 %v2148_v51  ;;  %v2245_v15 = vadd.f32 %v2321_v57, %v2244_v49  ;;  %v2963_v24 = vpop.f32.mrb[17].mxu1 }
 0xa08   :  { %3725 = vrcp.f32 %v2143_v1 }
 0xa09   :  { %2248 = vmax.xlane.f32.xlu0 %v2245_v15 }
 0xa11   :  { %v3724_v33 = vpop.eup %3723 }
 0xa12   :  { %v2150_v13 = vsub.f32 %v4634_v56, %v3724_v33  ;;  %v3726_v43 = vpop.eup %3725 }
 0xa14   :  { %v2151_v60 = vmul.f32 %v3726_v43, %v2150_v13 }
 0xa16   :  { %v2152_v63 = vadd.f32 %v3724_v33, %v2151_v60 }
 0xa18   :  { %2154 = vst [vmem:[#allocation14 + $0x8] sm:$0xff] %v2152_v63 }
 0xa96   :  { %v2249_v12 = vpop.xlane.xlu0 %2248 }
 0xa97   :  { %v2250_v14 = vsub.f32 %v2245_v15, %v2249_v12 }
 0xa99   :  { %v2251_v61 = vmul.f32 1.442695, %v2250_v14 }
 0xa9b   :  { %3727 = vpow2.f32 %v2251_v61 }
 0xaa5   :  { %v3728_v62 = vpop.eup %3727 }
 0xaa6   :  { %2253 = vadd.xlane.f32.xlu1 %v3728_v62 }
 0xaa7   :  { %3874 = shalt.err (!%p3871_p10)
}
 0xaa8   :  { %s3875_s24 = scalar_lea.hbm %s4698_s14, 256 }
 0xaa9   :  { %p3876_p11 = scmp.ne.s32.totalorder %s4698_s14, %s3875_s24  ;;  %p3879_p12 = scmp.lt.u32.totalorder %s3875_s24, %s4698_s14 }
 0xaab   :  { %p3881_p13 = pnand %p3879_p12, %p3876_p11 }
 0xaad   :  { %3884 = shalt.err (!%p3881_p13)
}
 0xaae   :  { %2281 = dma.vmem_to_hbm [thread:$0]  %s2276_s27, 256, %s4698_s14, [#allocation15], %s3924_s7, %s3924_s7, %s3925_s28  }
 0xaaf   :  { %s3935_s30 = smov [#allocation13]  }
 0xab0   :  { %s2266_s0 = sshll.u32 %s3935_s30, 4  ;;  %s2267_s0 = int_to_ptr.vmem [resolvable:$true] %s2266_s0 }
 0xab1   :  { %s3885_s19 = scalar_lea.vmem %s2267_s0, 128  ;;  %p3890_p1 = scmp.lt.s32.totalorder %s2267_s0, %s2267_s0 }
 0xab2   :  { %p3886_p0 = scmp.ne.s32.totalorder %s2267_s0, %s3885_s19  ;;  %p3891_p2 = scmp.lt.s32.totalorder %s3885_s19, %s3885_s19 }
 0xab4   :  { %p3892_p3 = por %p3891_p2, %p3890_p1 }
 0xab6   :  { %p3893_p4 = pnand %p3892_p3, %p3886_p0 }
 0xb33   :  { %v2254_v2 = vpop.xlane.xlu1 %2253 }
 0xb34   :  { %3729 = vlog2.f32 %v2254_v2 }
 0xb3e   :  { %v3730_v11 = vpop.eup %3729 }
 0xb3f   :  { %v2256_v22 = vmul.f32 0.6931472, %v3730_v11 }
 0xb41   :  { %v2257_v27 = vadd.f32 %v2256_v22, %v2249_v12 }
 0xb43   :  { %v2258_v32 = vsub.f32 %v2245_v15, %v2257_v27 }
 0xb45   :  { %2259 = vst [vmem:[#allocation13] sm:$0xff] %v2258_v32 }
 0xb46   :  { %3896 = shalt.err (!%p3893_p4)
}
 0xb47   :  { %s3897_s14 = scalar_lea.hbm %s4697_s13, 128 }
 0xb48   :  { %p3898_p5 = scmp.ne.s32.totalorder %s4697_s13, %s3897_s14  ;;  %p3901_p6 = scmp.lt.u32.totalorder %s3897_s14, %s4697_s13 }
 0xb4a   :  { %p3903_p7 = pnand %p3901_p6, %p3898_p5 }
 0xb4c   :  { %3906 = shalt.err (!%p3903_p7)
}
 0xb4d   :  { %2269 = dma.vmem_to_hbm [thread:$0]  %s2267_s0, 128, %s4697_s13, [#allocation4]  }
 0xb4e   :  { %3915 = dma.done.wait [#allocation4], 128  }
 0xb4f   :  { %3916 = vsyncadd [#allocation4], 4294967168 }
 0xb50   :  { %3917 = dma.done.wait [#allocation15], 256  }
 0xb51   :  { %3918 = vsyncadd [#allocation15], 4294967040 }
 0xb52   :  { %2288 = vsyncpa [#allocation3], 1 }
 0xb53   :  { %2289 = vsyncpa [#allocation6], 1 }
 0xb54   :  { %2290 = vsyncpa [#allocation9], 1 }
 0xb55   :  { %2291 = vsyncpa [#allocation12], 1 }
 0xb56   :  { %2292 = vsyncpa [#allocation4], 1 }
 0xb57   :  { %2293 = vsyncpa [#allocation15], 1 }

</bundles_post_ra>
